<compile_context>
chip_gen: v5e
topology: v5e:2x2
jax: 0.10.0
libtpu: 0.0.40
codegen_flags: <defaults>
</compile_context>

<pallas_src>
import functools
import math

import jax
import jax.numpy as jnp
from jax.experimental import pallas as pl
from jax.experimental.pallas import tpu as pltpu

IN_DIM = 1280
HID_DIM = 320
OUT_DIM = 1

_INV_SQRT2 = 1.0 / math.sqrt(2.0)
_SQRT_2_OVER_PI = math.sqrt(2.0 / math.pi)


def _round_up(n, m):
    return ((n + m - 1) // m) * m


def _gelu(v, approximate):
    if approximate:
        # tanh-approximate GELU: the tanh lowers to the EUP slot (free
        # alongside VALU/MXU); far fewer VALU ops than the erf polynomial.
        inner = _SQRT_2_OVER_PI * (v + 0.044715 * v * v * v)
        return 0.5 * v * (1.0 + jnp.tanh(inner))
    # Exact erf-based GELU (PyTorch nn.GELU() default).
    return 0.5 * v * (1.0 + jax.lax.erf(v * _INV_SQRT2))


def bmi_head_kernel(x_ref, w1_ref, b1_ref, w2_ref, b2_ref, o_ref, *, approximate):
    # x_ref:  (TB, 1280)   VMEM (bf16 default, or f32)
    # w1_ref: (1280, 320)  VMEM (bf16 default, or f32)
    # b1_ref: (1, 320)     VMEM f32
    # w2_ref: (1, 320)     VMEM f32  (second linear's weight as a row vector)
    # b2_ref: (1,)         SMEM f32
    # o_ref:  (TB, 1)      VMEM f32

    # linear1 (MXU, f32 accumulation) + bias + GELU (VPU/EUP).
    h = jnp.dot(x_ref[...], w1_ref[...], preferred_element_type=jnp.float32)
    h = _gelu(h + b1_ref[...], approximate)

    # dropout(p=0.5): identity in eval mode.

    # linear2 (320 -> 1) as a VPU broadcast-multiply + lane reduction instead
    # of an almost-empty N=1 MXU matmul.
    y = jnp.sum(h * w2_ref[...], axis=-1, keepdims=True) + b2_ref[0]
    o_ref[...] = _gelu(y, approximate).astype(o_ref.dtype)


def bmi_head_forward(
    x, w1, b1, w2, b2, *, tb=512, use_bf16=True, approximate_gelu=True
):
    """x: (B, 1280). Returns (B, 1) float32.

    Handles arbitrary batch sizes without a wrapper-side pad: the grid is
    pl.cdiv(B, tile) and Pallas masks the partial last block.
    """
    B = x.shape[0]
    assert x.shape[1] == IN_DIM

    compute_dtype = jnp.bfloat16 if use_bf16 else jnp.float32
    itemsize = 2 if use_bf16 else 4
    # bf16 packs 16 rows per sublane tile, f32 packs 8.
    row_align = 16 if use_bf16 else 8

    tb = max(row_align, _round_up(int(tb), row_align))
    if B < row_align:
        # Single full-array block; "block equals full dim" layout exception.
        tb_eff = B
    else:
        # Clamp so (a) tiny batches don't allocate huge tiles and (b) the grid
        # has >= 2 steps whenever possible, keeping both v7x TCs busy.
        half = _round_up(pl.cdiv(B, 2), row_align)
        tb_eff = min(tb, half)
    grid_steps = pl.cdiv(B, tb_eff)

    xm = x if x.dtype == compute_dtype else x.astype(compute_dtype)
    w1m = w1 if w1.dtype == compute_dtype else w1.astype(compute_dtype)
    b1r = b1.reshape(1, HID_DIM).astype(jnp.float32)
    w2row = w2.reshape(1, HID_DIM).astype(jnp.float32)
    b2s = b2.reshape(1).astype(jnp.float32)

    kernel = functools.partial(bmi_head_kernel, approximate=approximate_gelu)

    cost = pl.CostEstimate(
        flops=2 * B * IN_DIM * HID_DIM + 2 * B * HID_DIM,
        transcendentals=B * (HID_DIM + OUT_DIM),
        bytes_accessed=(
            B * IN_DIM * itemsize            # x stream (dominant)
            + IN_DIM * HID_DIM * itemsize    # w1 (read once)
            + (2 * HID_DIM + 1) * 4          # b1, w2 row, b2
            + B * OUT_DIM * 4                # output
        ),
    )

    out = pl.pallas_call(
        kernel,
        out_shape=jax.ShapeDtypeStruct((B, OUT_DIM), jnp.float32),
        grid_spec=pltpu.PrefetchScalarGridSpec(
            num_scalar_prefetch=0,
            grid=(grid_steps,),
            in_specs=[
                pl.BlockSpec((tb_eff, IN_DIM), lambda i: (i, 0)),    # x tile
                pl.BlockSpec((IN_DIM, HID_DIM), lambda i: (0, 0)),   # w1 (resident)
                pl.BlockSpec((1, HID_DIM), lambda i: (0, 0)),        # b1
                pl.BlockSpec((1, HID_DIM), lambda i: (0, 0)),        # w2 row
                pl.BlockSpec(memory_space=pltpu.MemorySpace.SMEM),   # b2 scalar
            ],
            out_specs=pl.BlockSpec((tb_eff, OUT_DIM), lambda i: (i, 0)),
        ),
        compiler_params=pltpu.CompilerParams(
            dimension_semantics=("parallel",),
            # Raise v5e's 16 MiB default scoped limit; comfortably within the
            # physical VMEM of every generation (v7x: 64 MiB).
            vmem_limit_bytes=32 * 1024 * 1024,
        ),
        cost_estimate=cost,
    )(xm, w1m, b1r, w2row, b2s)

    return out


def init_params(key):
    """Deterministic init mimicking nn.Linear's uniform(-1/sqrt(in), 1/sqrt(in))."""
    k1, k2, k3, k4 = jax.random.split(key, 4)
    bound1 = 1.0 / math.sqrt(IN_DIM)
    bound2 = 1.0 / math.sqrt(HID_DIM)
    # stored as (in, out) — transposed relative to PyTorch's (out, in)
    w1 = jax.random.uniform(k1, (IN_DIM, HID_DIM), jnp.float32, -bound1, bound1)
    b1 = jax.random.uniform(k2, (1, HID_DIM), jnp.float32, -bound1, bound1)
    w2 = jax.random.uniform(k3, (HID_DIM, OUT_DIM), jnp.float32, -bound2, bound2)
    b2 = jax.random.uniform(k4, (1, OUT_DIM), jnp.float32, -bound2, bound2)
    return w1, b1, w2, b2


def reference_forward(x, w1, b1, w2, b2, approximate=False):
    h = jax.nn.gelu(x @ w1 + b1, approximate=approximate)
    y = jax.nn.gelu(h @ w2 + b2, approximate=approximate)
    return y


if __name__ == "__main__":
    key = jax.random.PRNGKey(0)
    kx1, kx2, kp = jax.random.split(key, 3)
    w1, b1, w2, b2 = init_params(kp)

    # 1) Bit-faithful path (f32 + exact erf GELU), small batch, grid of 2.
    x_small = jax.random.normal(kx1, (16, IN_DIM), jnp.float32)
    out_exact = jax.block_until_ready(
        bmi_head_forward(x_small, w1, b1, w2, b2, use_bf16=False, approximate_gelu=False)
    )
    ref_exact = reference_forward(x_small, w1, b1, w2, b2, approximate=False)
    assert out_exact.shape == (16, OUT_DIM)
    assert jnp.allclose(out_exact, ref_exact, atol=2e-5, rtol=2e-5), (
        f"max abs err (f32 exact) {jnp.max(jnp.abs(out_exact - ref_exact))}"
    )

    # 2) Default fast path (bf16 + tanh GELU), aligned batch.
    out_fast = jax.block_until_ready(bmi_head_forward(x_small, w1, b1, w2, b2))
    assert jnp.allclose(out_fast, ref_exact, atol=5e-2, rtol=5e-2), (
        f"max abs err (bf16 fast) {jnp.max(jnp.abs(out_fast - ref_exact))}"
    )

    # 3) Ragged batch (exercises the non-divisible grid / masked last block).
    x_rag = jax.random.normal(kx2, (37, IN_DIM), jnp.float32)
    out_rag = jax.block_until_ready(bmi_head_forward(x_rag, w1, b1, w2, b2))
    ref_rag = reference_forward(x_rag, w1, b1, w2, b2, approximate=False)
    assert out_rag.shape == (37, OUT_DIM)
    assert jnp.allclose(out_rag, ref_rag, atol=5e-2, rtol=5e-2), (
        f"max abs err (ragged) {jnp.max(jnp.abs(out_rag - ref_rag))}"
    )

    print("KERNEL_OK")
</pallas_src>

<mosaic_0001>
module attributes {stable_mosaic.version = 11 : i64} {
  func.func @bmi_head_kernel(%arg0: i32, %arg1: memref<8x1280xf32, #tpu.memory_space<vmem>>, %arg2: memref<1280x320xf32, #tpu.memory_space<vmem>>, %arg3: memref<1x320xf32, #tpu.memory_space<vmem>>, %arg4: memref<1x320xf32, #tpu.memory_space<vmem>>, %arg5: memref<1xf32, #tpu.memory_space<smem>>, %arg6: memref<8x1xf32, #tpu.memory_space<vmem>>) attributes {dimension_semantics = [#tpu.dimension_semantics<parallel>], iteration_bounds = array<i64: 2>, scalar_prefetch = 0 : i64, scratch_operands = 0 : i64, tpu.core_type = #tpu.core_type<tc>, window_params = [{transform_indices = @transform_0, window_bounds = array<i64: 8, 1280>}, {pipeline_mode = #tpu.pipeline_mode<synchronous>, transform_indices = @transform_1, window_bounds = array<i64: 1280, 320>}, {pipeline_mode = #tpu.pipeline_mode<synchronous>, transform_indices = @transform_2, window_bounds = array<i64: 1, 320>}, {pipeline_mode = #tpu.pipeline_mode<synchronous>, transform_indices = @transform_3, window_bounds = array<i64: 1, 320>}, {transform_indices = @transform_4, window_bounds = array<i64: 1>}, {transform_indices = @transform_5, window_bounds = array<i64: 8, 1>}]} {
    %c0 = arith.constant 0 : index
    %c0_0 = arith.constant 0 : index
    %0 = vector.load %arg1[%c0, %c0_0] : memref<8x1280xf32, #tpu.memory_space<vmem>>, vector<8x1280xf32>
    %c0_1 = arith.constant 0 : index
    %c0_2 = arith.constant 0 : index
    %1 = vector.load %arg2[%c0_1, %c0_2] : memref<1280x320xf32, #tpu.memory_space<vmem>>, vector<1280x320xf32>
    %cst = arith.constant dense<0.000000e+00> : vector<8x320xf32>
    %2 = tpu.matmul %0, %1, %cst {dimension_numbers = #tpu.dot_dimension_numbers<[1], [0], [0], [1], [0, 0, 1, 1], [], []>} : vector<8x1280xf32>, vector<1280x320xf32>, vector<8x320xf32> -> vector<8x320xf32>
    %c0_3 = arith.constant 0 : index
    %c0_4 = arith.constant 0 : index
    %3 = vector.load %arg3[%c0_3, %c0_4] : memref<1x320xf32, #tpu.memory_space<vmem>>, vector<1x320xf32>
    %4 = vector.broadcast %3 : vector<1x320xf32> to vector<8x320xf32>
    %5 = arith.addf %2, %4 : vector<8x320xf32>
    %cst_5 = arith.constant 5.000000e-01 : f32
    %6 = vector.broadcast %cst_5 : f32 to vector<8x320xf32>
    %7 = arith.mulf %6, %5 : vector<8x320xf32>
    %cst_6 = arith.constant 0.707106769 : f32
    %8 = vector.broadcast %cst_6 : f32 to vector<8x320xf32>
    %9 = arith.mulf %5, %8 : vector<8x320xf32>
    %10 = math.erf %9 : vector<8x320xf32>
    %cst_7 = arith.constant 1.000000e+00 : f32
    %11 = vector.broadcast %cst_7 : f32 to vector<8x320xf32>
    %12 = arith.addf %11, %10 : vector<8x320xf32>
    %13 = arith.mulf %7, %12 : vector<8x320xf32>
    %c0_8 = arith.constant 0 : index
    %c0_9 = arith.constant 0 : index
    %14 = vector.load %arg4[%c0_8, %c0_9] : memref<1x320xf32, #tpu.memory_space<vmem>>, vector<1x320xf32>
    %15 = vector.broadcast %14 : vector<1x320xf32> to vector<8x320xf32>
    %16 = arith.mulf %13, %15 : vector<8x320xf32>
    %cst_10 = arith.constant dense<0.000000e+00> : vector<8xf32>
    %17 = vector.multi_reduction <add>, %16, %cst_10 [1] : vector<8x320xf32> to vector<8xf32>
    %18 = vector.shape_cast %17 : vector<8xf32> to vector<8x1xf32>
    %c0_11 = arith.constant 0 : index
    %19 = memref.load %arg5[%c0_11] : memref<1xf32, #tpu.memory_space<smem>>
    %20 = vector.broadcast %19 : f32 to vector<8x1xf32>
    %21 = arith.addf %18, %20 : vector<8x1xf32>
    %cst_12 = arith.constant 5.000000e-01 : f32
    %22 = vector.broadcast %cst_12 : f32 to vector<8x1xf32>
    %23 = arith.mulf %22, %21 : vector<8x1xf32>
    %cst_13 = arith.constant 0.707106769 : f32
    %24 = vector.broadcast %cst_13 : f32 to vector<8x1xf32>
    %25 = arith.mulf %21, %24 : vector<8x1xf32>
    %26 = math.erf %25 : vector<8x1xf32>
    %cst_14 = arith.constant 1.000000e+00 : f32
    %27 = vector.broadcast %cst_14 : f32 to vector<8x1xf32>
    %28 = arith.addf %27, %26 : vector<8x1xf32>
    %29 = arith.mulf %23, %28 : vector<8x1xf32>
    %c0_15 = arith.constant 0 : index
    %c0_16 = arith.constant 0 : index
    %30 = vector.load %arg6[%c0_15, %c0_16] : memref<8x1xf32, #tpu.memory_space<vmem>>, vector<8x1xf32>
    tpu.vector_store %arg6[%c0_15, %c0_16], %29 {strides = array<i32>} : memref<8x1xf32, #tpu.memory_space<vmem>>, vector<8x1xf32>,
    return
  }
  func.func @transform_0(%arg0: i32) -> (i32, i32) {
    %c0_i32 = arith.constant 0 : i32
    %c0_i32_0 = arith.constant 0 : i32
    return %arg0, %c0_i32 : i32, i32
  }
  func.func @transform_1(%arg0: i32) -> (i32, i32) {
    %c0_i32 = arith.constant 0 : i32
    %c0_i32_0 = arith.constant 0 : i32
    %c0_i32_1 = arith.constant 0 : i32
    return %c0_i32, %c0_i32_0 : i32, i32
  }
  func.func @transform_2(%arg0: i32) -> (i32, i32) {
    %c0_i32 = arith.constant 0 : i32
    %c0_i32_0 = arith.constant 0 : i32
    %c0_i32_1 = arith.constant 0 : i32
    return %c0_i32, %c0_i32_0 : i32, i32
  }
  func.func @transform_3(%arg0: i32) -> (i32, i32) {
    %c0_i32 = arith.constant 0 : i32
    %c0_i32_0 = arith.constant 0 : i32
    %c0_i32_1 = arith.constant 0 : i32
    return %c0_i32, %c0_i32_0 : i32, i32
  }
  func.func @transform_4(%arg0: i32) -> i32 {
    %c0_i32 = arith.constant 0 : i32
    %c0_i32_0 = arith.constant 0 : i32
    return %c0_i32 : i32
  }
  func.func @transform_5(%arg0: i32) -> (i32, i32) {
    %c0_i32 = arith.constant 0 : i32
    %c0_i32_0 = arith.constant 0 : i32
    return %arg0, %c0_i32 : i32, i32
  }
}

</mosaic_0001>

<bundles_post_ra>
// kernel: tpu_custom_call.1
= control target key start
LH: loop header
LB: loop body
LE: loop exit
PB: predicated region body
PF: predicated region fallthrough
CT: control target
= control target key end

     0   :  { %s1654_s20 = smov 0   ;;  %s3270_s0 = inlined_call_operand.vmem [shape: f32[16,1280], index: 0, kind: input, shape index: {}]   ;;  %s3271_s1 = inlined_call_operand.vmem [shape: f32[1280,320], index: 1, kind: input, shape index: {}]   ;;  %s3272_s2 = inlined_call_operand.vmem [shape: f32[1,320], index: 2, kind: input, shape index: {}]   ;;  %s3273_s3 = inlined_call_operand.vmem [shape: f32[1,320], index: 3, kind: input, shape index: {}]   ;;  %s3274_s4 = inlined_call_operand.<no memory space> [shape: f32[1], index: 4, kind: input, shape index: {}]   ;;  %s3275_s5 = inlined_call_operand.vmem [shape: f32[16,1], index: 5, kind: output, shape index: {}]  }
   0x1   :  { %10 = sst [smem:[#allocation2]] %s3274_s4 }
   0x2 LB: > { %s1573_s21 = sadd.s32 4294967295, %s1619_s20   ;;  %p1577_p0 = scmp.ge.s32.totalorder %s1619_s20, 1  ;;  %s1619_s20 = sphi %s1654_s20, %s16_s20  }
   0x3   : > { %p188_p1 = scmp.lt.s32.totalorder %s1619_s20, 3 }
   0x5   : > { %p189_p2 = pnand %p1577_p0, %p188_p1 }
   0x6   : > { %p1946_p3 = scmp.lt.s32.totalorder (!%p189_p2), %s1573_s21, 1  ;;  %s1471_s11 = sld [smem:[#allocation2]] (!%p189_p2) }
   0x7   : > { %192 = sbr.rel (%p189_p2) target bundleno = 634 (0x27a), region = 40 }
   0xc   : > { %v279_v0 = vld [vmem:[%s3271_s1 + $0x168] sm:$0xff]  ;;  %v276_v2 = vld [vmem:[%s3271_s1 + $0x150] sm:$0xff]  ;;  %v273_v6 = vld [vmem:[%s3271_s1 + $0x138] sm:$0xff]  ;;  %s3278_s21 = smov (!%p1946_p3, %s1573_s21), 1  ;;  %vm1466_vm12 = vcmask 523264  }
   0xd   : > { %v375_v1 = vld [vmem:[%s3271_s1 + $0x468] sm:$0xff]  ;;  %722 = vmatpush.msra.mxu0 %v279_v0  ;;  %v372_v4 = vld [vmem:[%s3271_s1 + $0x450] sm:$0xff]  ;;  %v369_v8 = vld [vmem:[%s3271_s1 + $0x438] sm:$0xff]  ;;  %s1586_s26 = smul.u32 80, %s3278_s21  ;;  %s1579_s12 = sshll.u32 %s3278_s21, 3 }
   0xe   : > { %762 = vmatpush.msra.mxu2 %v375_v1  ;;  %v327_v3 = vld [vmem:[%s3271_s1 + $0x2e8] sm:$0xff]  ;;  %v324_v7 = vld [vmem:[%s3271_s1 + $0x2d0] sm:$0xff]  ;;  %v321_v10 = vld [vmem:[%s3271_s1 + $0x2b8] sm:$0xff]  ;;  %s223_s15 = scalar_lea.vmem %s3275_s5, %s1579_s12 }
   0xf   : > { %v423_v5 = vld [vmem:[%s3271_s1 + $0x5e8] sm:$0xff]  ;;  %742 = vmatpush.msra.mxu1 %v327_v3  ;;  %723 = vmatpush.msra.mxu0 %v276_v2  ;;  %v420_v9 = vld [vmem:[%s3271_s1 + $0x5d0] sm:$0xff]  ;;  %v270_v11 = vld [vmem:[%s3271_s1 + $0x120] sm:$0xff]  ;;  %s2032_s22 = scalar_lea.vmem %s3270_s0, %s1586_s26 }
  0x10   : > { %782 = vmatpush.msra.mxu3 %v423_v5  ;;  %763 = vmatpush.msra.mxu2 %v372_v4  ;;  %v366_v12 = vld [vmem:[%s3271_s1 + $0x420] sm:$0xff]  ;;  %v417_v13 = vld [vmem:[%s3271_s1 + $0x5b8] sm:$0xff]  ;;  %v267_v16 = vld [vmem:[%s3271_s1 + $0x108] sm:$0xff] }
  0x11   : > { %743 = vmatpush.msra.mxu1 %v324_v7  ;;  %724 = vmatpush.msra.mxu0 %v273_v6  ;;  %v318_v14 = vld [vmem:[%s3271_s1 + $0x2a0] sm:$0xff]  ;;  %v363_v17 = vld [vmem:[%s3271_s1 + $0x408] sm:$0xff]  ;;  %v264_v20 = vld [vmem:[%s3271_s1 + $0xf0] sm:$0xff] }
  0x12   : > { %783 = vmatpush.msra.mxu3 %v420_v9  ;;  %764 = vmatpush.msra.mxu2 %v369_v8  ;;  %v414_v15 = vld [vmem:[%s3271_s1 + $0x5a0] sm:$0xff]  ;;  %v315_v18 = vld [vmem:[%s3271_s1 + $0x288] sm:$0xff]  ;;  %v360_v21 = vld [vmem:[%s3271_s1 + $0x3f0] sm:$0xff] }
  0x13   : > { %744 = vmatpush.msra.mxu1 %v321_v10  ;;  %725 = vmatpush.msra.mxu0 %v270_v11  ;;  %v411_v19 = vld [vmem:[%s3271_s1 + $0x588] sm:$0xff]  ;;  %v312_v22 = vld [vmem:[%s3271_s1 + $0x270] sm:$0xff]  ;;  %v261_v24 = vld [vmem:[%s3271_s1 + $0xd8] sm:$0xff] }
  0x14   : > { %784 = vmatpush.msra.mxu3 %v417_v13  ;;  %765 = vmatpush.msra.mxu2 %v366_v12  ;;  %v408_v23 = vld [vmem:[%s3271_s1 + $0x570] sm:$0xff]  ;;  %v357_v25 = vld [vmem:[%s3271_s1 + $0x3d8] sm:$0xff]  ;;  %v258_v28 = vld [vmem:[%s3271_s1 + $0xc0] sm:$0xff] }
  0x15   : > { %745 = vmatpush.msra.mxu1 %v318_v14  ;;  %726 = vmatpush.msra.mxu0 %v267_v16  ;;  %v309_v26 = vld [vmem:[%s3271_s1 + $0x258] sm:$0xff]  ;;  %v354_v29 = vld [vmem:[%s3271_s1 + $0x3c0] sm:$0xff]  ;;  %v255_v32 = vld [vmem:[%s3271_s1 + $0xa8] sm:$0xff] }
  0x16   : > { %785 = vmatpush.msra.mxu3 %v414_v15  ;;  %766 = vmatpush.msra.mxu2 %v363_v17  ;;  %v405_v27 = vld [vmem:[%s3271_s1 + $0x558] sm:$0xff]  ;;  %v306_v30 = vld [vmem:[%s3271_s1 + $0x240] sm:$0xff]  ;;  %v351_v33 = vld [vmem:[%s3271_s1 + $0x3a8] sm:$0xff] }
  0x17   : > { %746 = vmatpush.msra.mxu1 %v315_v18  ;;  %727 = vmatpush.msra.mxu0 %v264_v20  ;;  %v402_v31 = vld [vmem:[%s3271_s1 + $0x540] sm:$0xff]  ;;  %v303_v34 = vld [vmem:[%s3271_s1 + $0x228] sm:$0xff]  ;;  %v252_v36 = vld [vmem:[%s3271_s1 + $0x90] sm:$0xff] }
  0x18   : > { %786 = vmatpush.msra.mxu3 %v411_v19  ;;  %767 = vmatpush.msra.mxu2 %v360_v21  ;;  %v399_v35 = vld [vmem:[%s3271_s1 + $0x528] sm:$0xff]  ;;  %v348_v37 = vld [vmem:[%s3271_s1 + $0x390] sm:$0xff]  ;;  %v249_v40 = vld [vmem:[%s3271_s1 + $0x78] sm:$0xff] }
  0x19   : > { %747 = vmatpush.msra.mxu1 %v312_v22  ;;  %728 = vmatpush.msra.mxu0 %v261_v24  ;;  %v300_v38 = vld [vmem:[%s3271_s1 + $0x210] sm:$0xff]  ;;  %v345_v41 = vld [vmem:[%s3271_s1 + $0x378] sm:$0xff]  ;;  %v246_v44 = vld [vmem:[%s3271_s1 + $0x60] sm:$0xff] }
  0x1a   : > { %787 = vmatpush.msra.mxu3 %v408_v23  ;;  %768 = vmatpush.msra.mxu2 %v357_v25  ;;  %v396_v39 = vld [vmem:[%s3271_s1 + $0x510] sm:$0xff]  ;;  %v297_v42 = vld [vmem:[%s3271_s1 + $0x1f8] sm:$0xff]  ;;  %v342_v45 = vld [vmem:[%s3271_s1 + $0x360] sm:$0xff] }
  0x1b   : > { %748 = vmatpush.msra.mxu1 %v309_v26  ;;  %729 = vmatpush.msra.mxu0 %v258_v28  ;;  %v393_v43 = vld [vmem:[%s3271_s1 + $0x4f8] sm:$0xff]  ;;  %v294_v46 = vld [vmem:[%s3271_s1 + $0x1e0] sm:$0xff]  ;;  %v243_v48 = vld [vmem:[%s3271_s1 + $0x48] sm:$0xff] }
  0x1c   : > { %788 = vmatpush.msra.mxu3 %v405_v27  ;;  %769 = vmatpush.msra.mxu2 %v354_v29  ;;  %v390_v47 = vld [vmem:[%s3271_s1 + $0x4e0] sm:$0xff]  ;;  %v339_v49 = vld [vmem:[%s3271_s1 + $0x348] sm:$0xff]  ;;  %v240_v52 = vld [vmem:[%s3271_s1 + $0x30] sm:$0xff] }
  0x1d   : > { %749 = vmatpush.msra.mxu1 %v306_v30  ;;  %730 = vmatpush.msra.mxu0 %v255_v32  ;;  %v291_v50 = vld [vmem:[%s3271_s1 + $0x1c8] sm:$0xff]  ;;  %v336_v53 = vld [vmem:[%s3271_s1 + $0x330] sm:$0xff]  ;;  %v237_v56 = vld [vmem:[%s3271_s1 + $0x18] sm:$0xff] }
  0x1e   : > { %789 = vmatpush.msra.mxu3 %v402_v31  ;;  %770 = vmatpush.msra.mxu2 %v351_v33  ;;  %v387_v51 = vld [vmem:[%s3271_s1 + $0x4c8] sm:$0xff]  ;;  %v288_v54 = vld [vmem:[%s3271_s1 + $0x1b0] sm:$0xff]  ;;  %v333_v57 = vld [vmem:[%s3271_s1 + $0x318] sm:$0xff] }
  0x1f   : > { %750 = vmatpush.msra.mxu1 %v303_v34  ;;  %731 = vmatpush.msra.mxu0 %v252_v36  ;;  %v384_v55 = vld [vmem:[%s3271_s1 + $0x4b0] sm:$0xff]  ;;  %v285_v58 = vld [vmem:[%s3271_s1 + $0x198] sm:$0xff]  ;;  %v234_v60 = vld [vmem:[%s3271_s1] sm:$0xff] }
  0x20   : > { %790 = vmatpush.msra.mxu3 %v399_v35  ;;  %771 = vmatpush.msra.mxu2 %v348_v37  ;;  %v381_v59 = vld [vmem:[%s3271_s1 + $0x498] sm:$0xff]  ;;  %v330_v61 = vld [vmem:[%s3271_s1 + $0x300] sm:$0xff]  ;;  %v471_v62 = vld [vmem:[%s3271_s1 + $0x768] sm:$0xff] }
  0x21   : > { %751 = vmatpush.msra.mxu1 %v300_v38  ;;  %732 = vmatpush.msra.mxu0 %v249_v40  ;;  %v567_v63 = vld [vmem:[%s3271_s1 + $0xa68] sm:$0xff]  ;;  %v282_v0 = vld [vmem:[%s3271_s1 + $0x180] sm:$0xff]  ;;  %v468_v2 = vld [vmem:[%s3271_s1 + $0x750] sm:$0xff] }
  0x22   : > { %791 = vmatpush.msra.mxu3 %v396_v39  ;;  %772 = vmatpush.msra.mxu2 %v345_v41  ;;  %v378_v1 = vld [vmem:[%s3271_s1 + $0x480] sm:$0xff]  ;;  %v519_v3 = vld [vmem:[%s3271_s1 + $0x8e8] sm:$0xff]  ;;  %v564_v4 = vld [vmem:[%s3271_s1 + $0xa50] sm:$0xff] }
  0x23   : > { %752 = vmatpush.msra.mxu1 %v297_v42  ;;  %733 = vmatpush.msra.mxu0 %v246_v44  ;;  %v615_v5 = vld [vmem:[%s3271_s1 + $0xbe8] sm:$0xff]  ;;  %v465_v6 = vld [vmem:[%s3271_s1 + $0x738] sm:$0xff]  ;;  %v516_v7 = vld [vmem:[%s3271_s1 + $0x8d0] sm:$0xff] }
  0x24   : > { %792 = vmatpush.msra.mxu3 %v393_v43  ;;  %773 = vmatpush.msra.mxu2 %v342_v45  ;;  %v561_v8 = vld [vmem:[%s3271_s1 + $0xa38] sm:$0xff]  ;;  %v612_v9 = vld [vmem:[%s3271_s1 + $0xbd0] sm:$0xff]  ;;  %v462_v10 = vld [vmem:[%s3271_s1 + $0x720] sm:$0xff] }
  0x25   : > { %753 = vmatpush.msra.mxu1 %v294_v46  ;;  %734 = vmatpush.msra.mxu0 %v243_v48  ;;  %v513_v11 = vld [vmem:[%s3271_s1 + $0x8b8] sm:$0xff]  ;;  %v558_v12 = vld [vmem:[%s3271_s1 + $0xa20] sm:$0xff]  ;;  %v459_v14 = vld [vmem:[%s3271_s1 + $0x708] sm:$0xff] }
  0x26   : > { %793 = vmatpush.msra.mxu3 %v390_v47  ;;  %774 = vmatpush.msra.mxu2 %v339_v49  ;;  %v609_v13 = vld [vmem:[%s3271_s1 + $0xbb8] sm:$0xff]  ;;  %v510_v15 = vld [vmem:[%s3271_s1 + $0x8a0] sm:$0xff]  ;;  %v555_v16 = vld [vmem:[%s3271_s1 + $0xa08] sm:$0xff] }
  0x27   : > { %754 = vmatpush.msra.mxu1 %v291_v50  ;;  %735 = vmatpush.msra.mxu0 %v240_v52  ;;  %v606_v17 = vld [vmem:[%s3271_s1 + $0xba0] sm:$0xff]  ;;  %v456_v18 = vld [vmem:[%s3271_s1 + $0x6f0] sm:$0xff]  ;;  %v507_v19 = vld [vmem:[%s3271_s1 + $0x888] sm:$0xff] }
  0x28   : > { %794 = vmatpush.msra.mxu3 %v387_v51  ;;  %775 = vmatpush.msra.mxu2 %v336_v53  ;;  %v552_v20 = vld [vmem:[%s3271_s1 + $0x9f0] sm:$0xff]  ;;  %v603_v21 = vld [vmem:[%s3271_s1 + $0xb88] sm:$0xff]  ;;  %v453_v22 = vld [vmem:[%s3271_s1 + $0x6d8] sm:$0xff] }
  0x29   : > { %755 = vmatpush.msra.mxu1 %v288_v54  ;;  %736 = vmatpush.msra.mxu0 %v237_v56  ;;  %v504_v23 = vld [vmem:[%s3271_s1 + $0x870] sm:$0xff]  ;;  %v549_v24 = vld [vmem:[%s3271_s1 + $0x9d8] sm:$0xff]  ;;  %v450_v26 = vld [vmem:[%s3271_s1 + $0x6c0] sm:$0xff] }
  0x2a   : > { %795 = vmatpush.msra.mxu3 %v384_v55  ;;  %776 = vmatpush.msra.mxu2 %v333_v57  ;;  %v600_v25 = vld [vmem:[%s3271_s1 + $0xb70] sm:$0xff]  ;;  %v501_v27 = vld [vmem:[%s3271_s1 + $0x858] sm:$0xff]  ;;  %v546_v28 = vld [vmem:[%s3271_s1 + $0x9c0] sm:$0xff] }
  0x2b   : > { %756 = vmatpush.msra.mxu1 %v285_v58  ;;  %737 = vmatpush.msra.mxu0 %v234_v60  ;;  %v597_v29 = vld [vmem:[%s3271_s1 + $0xb58] sm:$0xff]  ;;  %v447_v30 = vld [vmem:[%s3271_s1 + $0x6a8] sm:$0xff]  ;;  %v498_v31 = vld [vmem:[%s3271_s1 + $0x840] sm:$0xff] }
  0x2c   : > { %796 = vmatpush.msra.mxu3 %v381_v59  ;;  %777 = vmatpush.msra.mxu2 %v330_v61  ;;  %v543_v32 = vld [vmem:[%s3271_s1 + $0x9a8] sm:$0xff]  ;;  %v594_v33 = vld [vmem:[%s3271_s1 + $0xb40] sm:$0xff]  ;;  %v444_v34 = vld [vmem:[%s3271_s1 + $0x690] sm:$0xff] }
  0x2d   : > { %802 = vmatpush.msrb.mxu0 %v471_v62  ;;  %757 = vmatpush.msra.mxu1 %v282_v0  ;;  %v495_v35 = vld [vmem:[%s3271_s1 + $0x828] sm:$0xff]  ;;  %v540_v36 = vld [vmem:[%s3271_s1 + $0x990] sm:$0xff]  ;;  %v441_v38 = vld [vmem:[%s3271_s1 + $0x678] sm:$0xff] }
  0x2e   : > { %842 = vmatpush.msrb.mxu2 %v567_v63  ;;  %797 = vmatpush.msra.mxu3 %v378_v1  ;;  %v591_v37 = vld [vmem:[%s3271_s1 + $0xb28] sm:$0xff]  ;;  %v492_v39 = vld [vmem:[%s3271_s1 + $0x810] sm:$0xff]  ;;  %v537_v40 = vld [vmem:[%s3271_s1 + $0x978] sm:$0xff] }
  0x2f   : > { %803 = vmatpush.msrb.mxu0 %v468_v2  ;;  %822 = vmatpush.msrb.mxu1 %v519_v3  ;;  %v588_v41 = vld [vmem:[%s3271_s1 + $0xb10] sm:$0xff]  ;;  %v438_v42 = vld [vmem:[%s3271_s1 + $0x660] sm:$0xff]  ;;  %v489_v43 = vld [vmem:[%s3271_s1 + $0x7f8] sm:$0xff] }
  0x30   : > { %843 = vmatpush.msrb.mxu2 %v564_v4  ;;  %862 = vmatpush.msrb.mxu3 %v615_v5  ;;  %v534_v44 = vld [vmem:[%s3271_s1 + $0x960] sm:$0xff]  ;;  %v585_v45 = vld [vmem:[%s3271_s1 + $0xaf8] sm:$0xff]  ;;  %v435_v46 = vld [vmem:[%s3271_s1 + $0x648] sm:$0xff] }
  0x31   : > { %804 = vmatpush.msrb.mxu0 %v465_v6  ;;  %823 = vmatpush.msrb.mxu1 %v516_v7  ;;  %v486_v47 = vld [vmem:[%s3271_s1 + $0x7e0] sm:$0xff]  ;;  %v531_v48 = vld [vmem:[%s3271_s1 + $0x948] sm:$0xff]  ;;  %v432_v50 = vld [vmem:[%s3271_s1 + $0x630] sm:$0xff] }
  0x32   : > { %844 = vmatpush.msrb.mxu2 %v561_v8  ;;  %863 = vmatpush.msrb.mxu3 %v612_v9  ;;  %v582_v49 = vld [vmem:[%s3271_s1 + $0xae0] sm:$0xff]  ;;  %v483_v51 = vld [vmem:[%s3271_s1 + $0x7c8] sm:$0xff]  ;;  %v528_v52 = vld [vmem:[%s3271_s1 + $0x930] sm:$0xff] }
  0x33   : > { %805 = vmatpush.msrb.mxu0 %v462_v10  ;;  %824 = vmatpush.msrb.mxu1 %v513_v11  ;;  %v579_v53 = vld [vmem:[%s3271_s1 + $0xac8] sm:$0xff]  ;;  %v429_v54 = vld [vmem:[%s3271_s1 + $0x618] sm:$0xff]  ;;  %v480_v55 = vld [vmem:[%s3271_s1 + $0x7b0] sm:$0xff] }
  0x34   : > { %845 = vmatpush.msrb.mxu2 %v558_v12  ;;  %864 = vmatpush.msrb.mxu3 %v609_v13  ;;  %v525_v56 = vld [vmem:[%s3271_s1 + $0x918] sm:$0xff]  ;;  %v576_v57 = vld [vmem:[%s3271_s1 + $0xab0] sm:$0xff]  ;;  %v426_v59 = vld [vmem:[%s3271_s1 + $0x600] sm:$0xff] }
  0x35   : > { %806 = vmatpush.msrb.mxu0 %v459_v14  ;;  %825 = vmatpush.msrb.mxu1 %v510_v15  ;;  %v2047_v58 = vld [vmem:[%s2032_s22 + $0x10] sm:$0xff]  ;;  %v477_v60 = vld [vmem:[%s3271_s1 + $0x798] sm:$0xff]  ;;  %v522_v61 = vld [vmem:[%s3271_s1 + $0x900] sm:$0xff] }
  0x36   : > { %846 = vmatpush.msrb.mxu2 %v555_v16  ;;  %865 = vmatpush.msrb.mxu3 %v606_v17  ;;  %v573_v62 = vld [vmem:[%s3271_s1 + $0xa98] sm:$0xff]  ;;  %v2062_v63 = vld [vmem:[%s2032_s22] sm:$0xff]  ;;  %v663_v1 = vld [vmem:[%s3271_s1 + $0xd68] sm:$0xff] }
  0x37   : > { %807 = vmatpush.msrb.mxu0 %v456_v18  ;;  %826 = vmatpush.msrb.mxu1 %v507_v19  ;;  %v2066_v0 = vld [vmem:[%s2032_s22 + $0x18] sm:$0xff]  ;;  %v280_v2 = vld [vmem:[%s3271_s1 + $0x170] sm:$0xff]  ;;  %v474_v3 = vld [vmem:[%s3271_s1 + $0x780] sm:$0xff] }
  0x38   : > { %847 = vmatpush.msrb.mxu2 %v552_v20  ;;  %866 = vmatpush.msrb.mxu3 %v603_v21  ;;  %v570_v4 = vld [vmem:[%s3271_s1 + $0xa80] sm:$0xff]  ;;  %v2082_v5 = vld [vmem:[%s2032_s22 + $0x8] sm:$0xff]  ;;  %v660_v6 = vld [vmem:[%s3271_s1 + $0xd50] sm:$0xff] }
  0x39   : > { %808 = vmatpush.msrb.mxu0 %v453_v22  ;;  %827 = vmatpush.msrb.mxu1 %v504_v23  ;;  %v711_v7 = vld [vmem:[%s3271_s1 + $0xee8] sm:$0xff]  ;;  %v277_v8 = vld [vmem:[%s3271_s1 + $0x158] sm:$0xff]  ;;  %v328_v9 = vld [vmem:[%s3271_s1 + $0x2f0] sm:$0xff] }
  0x3a   : > { %848 = vmatpush.msrb.mxu2 %v549_v24  ;;  %867 = vmatpush.msrb.mxu3 %v600_v25  ;;  %v657_v10 = vld [vmem:[%s3271_s1 + $0xd38] sm:$0xff]  ;;  %v708_v11 = vld [vmem:[%s3271_s1 + $0xed0] sm:$0xff]  ;;  %v274_v12 = vld [vmem:[%s3271_s1 + $0x140] sm:$0xff] }
  0x3b   : > { %809 = vmatpush.msrb.mxu0 %v450_v26  ;;  %828 = vmatpush.msrb.mxu1 %v501_v27  ;;  %v325_v13 = vld [vmem:[%s3271_s1 + $0x2d8] sm:$0xff]  ;;  %v2111_v14 = vld [vmem:[%s2032_s22 + $0x30] sm:$0xff]  ;;  %v654_v15 = vld [vmem:[%s3271_s1 + $0xd20] sm:$0xff] }
  0x3c   : > { %849 = vmatpush.msrb.mxu2 %v546_v28  ;;  %868 = vmatpush.msrb.mxu3 %v597_v29  ;;  %v705_v16 = vld [vmem:[%s3271_s1 + $0xeb8] sm:$0xff]  ;;  %v271_v17 = vld [vmem:[%s3271_s1 + $0x128] sm:$0xff]  ;;  %v322_v18 = vld [vmem:[%s3271_s1 + $0x2c0] sm:$0xff] }
  0x3d   : > { %810 = vmatpush.msrb.mxu0 %v447_v30  ;;  %829 = vmatpush.msrb.mxu1 %v498_v31  ;;  %v2126_v19 = vld [vmem:[%s2032_s22 + $0x20] sm:$0xff]  ;;  %v2130_v20 = vld [vmem:[%s2032_s22 + $0x38] sm:$0xff]  ;;  %v651_v21 = vld [vmem:[%s3271_s1 + $0xd08] sm:$0xff] }
  0x3e   : > { %850 = vmatpush.msrb.mxu2 %v543_v32  ;;  %869 = vmatpush.msrb.mxu3 %v594_v33  ;;  %v702_v22 = vld [vmem:[%s3271_s1 + $0xea0] sm:$0xff]  ;;  %v268_v23 = vld [vmem:[%s3271_s1 + $0x110] sm:$0xff]  ;;  %v319_v24 = vld [vmem:[%s3271_s1 + $0x2a8] sm:$0xff] }
  0x3f   : > { %811 = vmatpush.msrb.mxu0 %v444_v34  ;;  %830 = vmatpush.msrb.mxu1 %v495_v35  ;;  %v2146_v25 = vld [vmem:[%s2032_s22 + $0x28] sm:$0xff]  ;;  %v648_v26 = vld [vmem:[%s3271_s1 + $0xcf0] sm:$0xff]  ;;  %v265_v28 = vld [vmem:[%s3271_s1 + $0xf8] sm:$0xff] }
  0x40   : > { %851 = vmatpush.msrb.mxu2 %v540_v36  ;;  %870 = vmatpush.msrb.mxu3 %v591_v37  ;;  %v699_v27 = vld [vmem:[%s3271_s1 + $0xe88] sm:$0xff]  ;;  %v316_v29 = vld [vmem:[%s3271_s1 + $0x290] sm:$0xff]  ;;  %v645_v30 = vld [vmem:[%s3271_s1 + $0xcd8] sm:$0xff] }
  0x41   : > { %812 = vmatpush.msrb.mxu0 %v441_v38  ;;  %831 = vmatpush.msrb.mxu1 %v492_v39  ;;  %v696_v31 = vld [vmem:[%s3271_s1 + $0xe70] sm:$0xff]  ;;  %v262_v32 = vld [vmem:[%s3271_s1 + $0xe0] sm:$0xff]  ;;  %v313_v33 = vld [vmem:[%s3271_s1 + $0x278] sm:$0xff] }
  0x42   : > { %852 = vmatpush.msrb.mxu2 %v537_v40  ;;  %871 = vmatpush.msrb.mxu3 %v588_v41  ;;  %v642_v34 = vld [vmem:[%s3271_s1 + $0xcc0] sm:$0xff]  ;;  %v693_v35 = vld [vmem:[%s3271_s1 + $0xe58] sm:$0xff]  ;;  %v259_v36 = vld [vmem:[%s3271_s1 + $0xc8] sm:$0xff] }
  0x43   : > { %813 = vmatpush.msrb.mxu0 %v438_v42  ;;  %832 = vmatpush.msrb.mxu1 %v489_v43  ;;  %v310_v37 = vld [vmem:[%s3271_s1 + $0x260] sm:$0xff]  ;;  %v639_v38 = vld [vmem:[%s3271_s1 + $0xca8] sm:$0xff]  ;;  %v256_v40 = vld [vmem:[%s3271_s1 + $0xb0] sm:$0xff] }
  0x44   : > { %853 = vmatpush.msrb.mxu2 %v534_v44  ;;  %872 = vmatpush.msrb.mxu3 %v585_v45  ;;  %v690_v39 = vld [vmem:[%s3271_s1 + $0xe40] sm:$0xff]  ;;  %v307_v41 = vld [vmem:[%s3271_s1 + $0x248] sm:$0xff]  ;;  %v636_v42 = vld [vmem:[%s3271_s1 + $0xc90] sm:$0xff] }
  0x45   : > { %814 = vmatpush.msrb.mxu0 %v435_v46  ;;  %833 = vmatpush.msrb.mxu1 %v486_v47  ;;  %v687_v43 = vld [vmem:[%s3271_s1 + $0xe28] sm:$0xff]  ;;  %v253_v44 = vld [vmem:[%s3271_s1 + $0x98] sm:$0xff]  ;;  %v304_v45 = vld [vmem:[%s3271_s1 + $0x230] sm:$0xff] }
  0x46   : > { %854 = vmatpush.msrb.mxu2 %v531_v48  ;;  %873 = vmatpush.msrb.mxu3 %v582_v49  ;;  %v633_v46 = vld [vmem:[%s3271_s1 + $0xc78] sm:$0xff]  ;;  %v684_v47 = vld [vmem:[%s3271_s1 + $0xe10] sm:$0xff]  ;;  %v250_v48 = vld [vmem:[%s3271_s1 + $0x80] sm:$0xff] }
  0x47   : > { %815 = vmatpush.msrb.mxu0 %v432_v50  ;;  %834 = vmatpush.msrb.mxu1 %v483_v51  ;;  %v301_v49 = vld [vmem:[%s3271_s1 + $0x218] sm:$0xff]  ;;  %v630_v50 = vld [vmem:[%s3271_s1 + $0xc60] sm:$0xff] }
  0x48   : > { %855 = vmatpush.msrb.mxu2 %v528_v52  ;;  %874 = vmatpush.msrb.mxu3 %v579_v53  ;;  %v681_v51 = vld [vmem:[%s3271_s1 + $0xdf8] sm:$0xff]  ;;  %v247_v52 = vld [vmem:[%s3271_s1 + $0x68] sm:$0xff]  ;;  %v298_v53 = vld [vmem:[%s3271_s1 + $0x200] sm:$0xff] }
  0x49   : > { %816 = vmatpush.msrb.mxu0 %v429_v54  ;;  %835 = vmatpush.msrb.mxu1 %v480_v55  ;;  %v627_v54 = vld [vmem:[%s3271_s1 + $0xc48] sm:$0xff]  ;;  %v678_v55 = vld [vmem:[%s3271_s1 + $0xde0] sm:$0xff] }
  0x4a   : > { %856 = vmatpush.msrb.mxu2 %v525_v56  ;;  %875 = vmatpush.msrb.mxu3 %v576_v57  ;;  %v244_v56 = vld [vmem:[%s3271_s1 + $0x50] sm:$0xff]  ;;  %v295_v57 = vld [vmem:[%s3271_s1 + $0x1e8] sm:$0xff] }
  0x4b   : > { %778 = vmatmul.f32.vlgmr.msra.gmra.mxu2 %v2047_v58  ;;  %817 = vmatpush.msrb.mxu0 %v426_v59  ;;  %v624_v59 = vld [vmem:[%s3271_s1 + $0xc30] sm:$0xff] }
  0x4c   : > { %836 = vmatpush.msrb.mxu1 %v477_v60  ;;  %857 = vmatpush.msrb.mxu2 %v522_v61  ;;  %v675_v60 = vld [vmem:[%s3271_s1 + $0xdc8] sm:$0xff]  ;;  %v241_v61 = vld [vmem:[%s3271_s1 + $0x38] sm:$0xff] }
  0x4d   : > { %876 = vmatpush.msrb.mxu3 %v573_v62  ;;  %738 = vmatmul.f32.vlgmr.msra.gmra.mxu0 %v2062_v63  ;;  %v292_v62 = vld [vmem:[%s3271_s1 + $0x1d0] sm:$0xff] }
  0x4e   : > { %798 = vmatmul.f32.vlgmr.msra.gmra.mxu3 %v2066_v0  ;;  %882 = vmatpush.msra.mxu0 %v663_v1  ;;  %v621_v1 = vld [vmem:[%s3271_s1 + $0xc18] sm:$0xff] }
  0x4f   : > { %922 = vmatpush.msra.mxu2 %v280_v2  ;;  %837 = vmatpush.msrb.mxu1 %v474_v3  ;;  %v672_v2 = vld [vmem:[%s3271_s1 + $0xdb0] sm:$0xff]  ;;  %v238_v3 = vld [vmem:[%s3271_s1 + $0x20] sm:$0xff] }
  0x50   : > { %877 = vmatpush.msrb.mxu3 %v570_v4  ;;  %758 = vmatmul.f32.vlgmr.msra.gmra.mxu1 %v2082_v5  ;;  %v289_v4 = vld [vmem:[%s3271_s1 + $0x1b8] sm:$0xff] }
  0x51   : > { %883 = vmatpush.msra.mxu0 %v660_v6  ;;  %902 = vmatpush.msra.mxu1 %v711_v7  ;;  %v618_v6 = vld [vmem:[%s3271_s1 + $0xc00] sm:$0xff]  ;;  %v669_v7 = vld [vmem:[%s3271_s1 + $0xd98] sm:$0xff] }
  0x52   : > { %923 = vmatpush.msra.mxu2 %v277_v8  ;;  %942 = vmatpush.msra.mxu3 %v328_v9  ;;  %v235_v8 = vld [vmem:[%s3271_s1 + $0x8] sm:$0xff]  ;;  %v286_v9 = vld [vmem:[%s3271_s1 + $0x1a0] sm:$0xff] }
  0x53   : > { %884 = vmatpush.msra.mxu0 %v657_v10  ;;  %903 = vmatpush.msra.mxu1 %v708_v11  ;;  %v2283_v10 = vld [vmem:[%s2032_s22 + $0x40] sm:$0xff]  ;;  %v472_v11 = vld [vmem:[%s3271_s1 + $0x770] sm:$0xff] }
  0x54   : > { %924 = vmatpush.msra.mxu2 %v274_v12  ;;  %943 = vmatpush.msra.mxu3 %v325_v13  ;;  %v376_v12 = vld [vmem:[%s3271_s1 + $0x470] sm:$0xff]  ;;  %v666_v13 = vld [vmem:[%s3271_s1 + $0xd80] sm:$0xff] }
  0x55   : > { %858 = vmatmul.f32.vlgmr.msrb.gmra.mxu2 %v2111_v14  ;;  %885 = vmatpush.msra.mxu0 %v654_v15  ;;  %v283_v15 = vld [vmem:[%s3271_s1 + $0x188] sm:$0xff] }
  0x56   : > { %904 = vmatpush.msra.mxu1 %v705_v16  ;;  %925 = vmatpush.msra.mxu2 %v271_v17  ;;  %v2298_v16 = vld [vmem:[%s2032_s22 + $0x48] sm:$0xff]  ;;  %v373_v17 = vld [vmem:[%s3271_s1 + $0x458] sm:$0xff] }
  0x57   : > { %944 = vmatpush.msra.mxu3 %v322_v18  ;;  %818 = vmatmul.f32.vlgmr.msrb.gmra.mxu0 %v2126_v19  ;;  %v424_v18 = vld [vmem:[%s3271_s1 + $0x5f0] sm:$0xff] }
  0x58   : > { %878 = vmatmul.f32.vlgmr.msrb.gmra.mxu3 %v2130_v20  ;;  %886 = vmatpush.msra.mxu0 %v651_v21  ;;  %v469_v21 = vld [vmem:[%s3271_s1 + $0x758] sm:$0xff] }
  0x59   : > { %905 = vmatpush.msra.mxu1 %v702_v22  ;;  %926 = vmatpush.msra.mxu2 %v268_v23  ;;  %v520_v22 = vld [vmem:[%s3271_s1 + $0x8f0] sm:$0xff]  ;;  %v370_v23 = vld [vmem:[%s3271_s1 + $0x440] sm:$0xff] }
  0x5a   : > { %945 = vmatpush.msra.mxu3 %v319_v24  ;;  %838 = vmatmul.f32.vlgmr.msrb.gmra.mxu1 %v2146_v25  ;;  %v421_v24 = vld [vmem:[%s3271_s1 + $0x5d8] sm:$0xff] }
  0x5b   : > { %887 = vmatpush.msra.mxu0 %v648_v26  ;;  %906 = vmatpush.msra.mxu1 %v699_v27  ;;  %v466_v26 = vld [vmem:[%s3271_s1 + $0x740] sm:$0xff]  ;;  %v517_v27 = vld [vmem:[%s3271_s1 + $0x8d8] sm:$0xff] }
  0x5c   : > { %927 = vmatpush.msra.mxu2 %v265_v28  ;;  %946 = vmatpush.msra.mxu3 %v316_v29  ;;  %v367_v28 = vld [vmem:[%s3271_s1 + $0x428] sm:$0xff]  ;;  %v418_v29 = vld [vmem:[%s3271_s1 + $0x5c0] sm:$0xff] }
  0x5d   : > { %888 = vmatpush.msra.mxu0 %v645_v30  ;;  %907 = vmatpush.msra.mxu1 %v696_v31  ;;  %v463_v30 = vld [vmem:[%s3271_s1 + $0x728] sm:$0xff]  ;;  %v514_v31 = vld [vmem:[%s3271_s1 + $0x8c0] sm:$0xff] }
  0x5e   : > { %928 = vmatpush.msra.mxu2 %v262_v32  ;;  %947 = vmatpush.msra.mxu3 %v313_v33  ;;  %v364_v32 = vld [vmem:[%s3271_s1 + $0x410] sm:$0xff]  ;;  %v415_v33 = vld [vmem:[%s3271_s1 + $0x5a8] sm:$0xff] }
  0x5f   : > { %889 = vmatpush.msra.mxu0 %v642_v34  ;;  %908 = vmatpush.msra.mxu1 %v693_v35  ;;  %v460_v34 = vld [vmem:[%s3271_s1 + $0x710] sm:$0xff]  ;;  %v511_v35 = vld [vmem:[%s3271_s1 + $0x8a8] sm:$0xff] }
  0x60   : > { %929 = vmatpush.msra.mxu2 %v259_v36  ;;  %948 = vmatpush.msra.mxu3 %v310_v37  ;;  %v361_v36 = vld [vmem:[%s3271_s1 + $0x3f8] sm:$0xff]  ;;  %v412_v37 = vld [vmem:[%s3271_s1 + $0x590] sm:$0xff] }
  0x61   : > { %890 = vmatpush.msra.mxu0 %v639_v38  ;;  %909 = vmatpush.msra.mxu1 %v690_v39  ;;  %v457_v38 = vld [vmem:[%s3271_s1 + $0x6f8] sm:$0xff]  ;;  %v508_v39 = vld [vmem:[%s3271_s1 + $0x890] sm:$0xff] }
  0x62   : > { %930 = vmatpush.msra.mxu2 %v256_v40  ;;  %949 = vmatpush.msra.mxu3 %v307_v41  ;;  %v358_v40 = vld [vmem:[%s3271_s1 + $0x3e0] sm:$0xff]  ;;  %v409_v41 = vld [vmem:[%s3271_s1 + $0x578] sm:$0xff] }
  0x63   : > { %891 = vmatpush.msra.mxu0 %v636_v42  ;;  %910 = vmatpush.msra.mxu1 %v687_v43  ;;  %v454_v42 = vld [vmem:[%s3271_s1 + $0x6e0] sm:$0xff]  ;;  %v505_v43 = vld [vmem:[%s3271_s1 + $0x878] sm:$0xff] }
  0x64   : > { %931 = vmatpush.msra.mxu2 %v253_v44  ;;  %950 = vmatpush.msra.mxu3 %v304_v45  ;;  %v355_v44 = vld [vmem:[%s3271_s1 + $0x3c8] sm:$0xff]  ;;  %v406_v45 = vld [vmem:[%s3271_s1 + $0x560] sm:$0xff] }
  0x65   : > { %892 = vmatpush.msra.mxu0 %v633_v46  ;;  %911 = vmatpush.msra.mxu1 %v684_v47  ;;  %v451_v46 = vld [vmem:[%s3271_s1 + $0x6c8] sm:$0xff]  ;;  %v502_v47 = vld [vmem:[%s3271_s1 + $0x860] sm:$0xff] }
  0x66   : > { %932 = vmatpush.msra.mxu2 %v250_v48  ;;  %951 = vmatpush.msra.mxu3 %v301_v49  ;;  %v352_v48 = vld [vmem:[%s3271_s1 + $0x3b0] sm:$0xff]  ;;  %v403_v49 = vld [vmem:[%s3271_s1 + $0x548] sm:$0xff] }
  0x67   : > { %893 = vmatpush.msra.mxu0 %v630_v50  ;;  %912 = vmatpush.msra.mxu1 %v681_v51  ;;  %v448_v50 = vld [vmem:[%s3271_s1 + $0x6b0] sm:$0xff]  ;;  %v499_v51 = vld [vmem:[%s3271_s1 + $0x848] sm:$0xff] }
  0x68   : > { %933 = vmatpush.msra.mxu2 %v247_v52  ;;  %952 = vmatpush.msra.mxu3 %v298_v53  ;;  %v349_v52 = vld [vmem:[%s3271_s1 + $0x398] sm:$0xff]  ;;  %v400_v53 = vld [vmem:[%s3271_s1 + $0x530] sm:$0xff] }
  0x69   : > { %894 = vmatpush.msra.mxu0 %v627_v54  ;;  %913 = vmatpush.msra.mxu1 %v678_v55  ;;  %v445_v54 = vld [vmem:[%s3271_s1 + $0x698] sm:$0xff]  ;;  %v496_v55 = vld [vmem:[%s3271_s1 + $0x830] sm:$0xff] }
  0x6a   : > { %934 = vmatpush.msra.mxu2 %v244_v56  ;;  %953 = vmatpush.msra.mxu3 %v295_v57  ;;  %v346_v56 = vld [vmem:[%s3271_s1 + $0x380] sm:$0xff]  ;;  %v397_v57 = vld [vmem:[%s3271_s1 + $0x518] sm:$0xff] }
  0x6b   : > { %895 = vmatpush.msra.mxu0 %v624_v59  ;;  %914 = vmatpush.msra.mxu1 %v675_v60  ;;  %v442_v59 = vld [vmem:[%s3271_s1 + $0x680] sm:$0xff]  ;;  %v493_v60 = vld [vmem:[%s3271_s1 + $0x818] sm:$0xff] }
  0x6c   : > { %935 = vmatpush.msra.mxu2 %v241_v61  ;;  %954 = vmatpush.msra.mxu3 %v292_v62  ;;  %v343_v61 = vld [vmem:[%s3271_s1 + $0x368] sm:$0xff]  ;;  %v394_v62 = vld [vmem:[%s3271_s1 + $0x500] sm:$0xff] }
  0x6d   : > { %896 = vmatpush.msra.mxu0 %v621_v1  ;;  %915 = vmatpush.msra.mxu1 %v672_v2  ;;  %v439_v1 = vld [vmem:[%s3271_s1 + $0x668] sm:$0xff]  ;;  %v490_v2 = vld [vmem:[%s3271_s1 + $0x800] sm:$0xff] }
  0x6e   : > { %936 = vmatpush.msra.mxu2 %v238_v3  ;;  %955 = vmatpush.msra.mxu3 %v289_v4  ;;  %v340_v3 = vld [vmem:[%s3271_s1 + $0x350] sm:$0xff]  ;;  %v391_v4 = vld [vmem:[%s3271_s1 + $0x4e8] sm:$0xff] }
  0x6f   : > { %897 = vmatpush.msra.mxu0 %v618_v6  ;;  %916 = vmatpush.msra.mxu1 %v669_v7  ;;  %v436_v6 = vld [vmem:[%s3271_s1 + $0x650] sm:$0xff]  ;;  %v487_v7 = vld [vmem:[%s3271_s1 + $0x7e8] sm:$0xff] }
  0x70   : > { %937 = vmatpush.msra.mxu2 %v235_v8  ;;  %956 = vmatpush.msra.mxu3 %v286_v9  ;;  %v337_v8 = vld [vmem:[%s3271_s1 + $0x338] sm:$0xff]  ;;  %v388_v9 = vld [vmem:[%s3271_s1 + $0x4d0] sm:$0xff] }
  0x71   : > { %898 = vmatmul.f32.vlgmr.msra.gmra.mxu0 %v2283_v10  ;;  %917 = vmatpush.msra.mxu1 %v666_v13  ;;  %v334_v13 = vld [vmem:[%s3271_s1 + $0x320] sm:$0xff] }
  0x72   : > { %1002 = vmatpush.msrb.mxu2 %v472_v11  ;;  %962 = vmatpush.msrb.mxu0 %v376_v12  ;;  %v433_v11 = vld [vmem:[%s3271_s1 + $0x638] sm:$0xff]  ;;  %v484_v12 = vld [vmem:[%s3271_s1 + $0x7d0] sm:$0xff] }
  0x73   : > { %957 = vmatpush.msra.mxu3 %v283_v15  ;;  %918 = vmatmul.f32.vlgmr.msra.gmra.mxu1 %v2298_v16  ;;  %v385_v15 = vld [vmem:[%s3271_s1 + $0x4b8] sm:$0xff] }
  0x74   : > { %963 = vmatpush.msrb.mxu0 %v373_v17  ;;  %982 = vmatpush.msrb.mxu1 %v424_v18  ;;  %v430_v17 = vld [vmem:[%s3271_s1 + $0x620] sm:$0xff]  ;;  %v481_v18 = vld [vmem:[%s3271_s1 + $0x7b8] sm:$0xff] }
  0x75   : > { %1003 = vmatpush.msrb.mxu2 %v469_v21  ;;  %1022 = vmatpush.msrb.mxu3 %v520_v22  ;;  %v331_v21 = vld [vmem:[%s3271_s1 + $0x308] sm:$0xff]  ;;  %v382_v22 = vld [vmem:[%s3271_s1 + $0x4a0] sm:$0xff] }
  0x76   : > { %964 = vmatpush.msrb.mxu0 %v370_v23  ;;  %983 = vmatpush.msrb.mxu1 %v421_v24  ;;  %v427_v23 = vld [vmem:[%s3271_s1 + $0x608] sm:$0xff]  ;;  %v478_v24 = vld [vmem:[%s3271_s1 + $0x7a0] sm:$0xff] }
  0x77   : > { %1004 = vmatpush.msrb.mxu2 %v466_v26  ;;  %1023 = vmatpush.msrb.mxu3 %v517_v27  ;;  %v568_v26 = vld [vmem:[%s3271_s1 + $0xa70] sm:$0xff] }
  0x78   : > { %965 = vmatpush.msrb.mxu0 %v367_v28  ;;  %984 = vmatpush.msrb.mxu1 %v418_v29  ;;  %v664_v27 = vld [vmem:[%s3271_s1 + $0xd70] sm:$0xff]  ;;  %v379_v28 = vld [vmem:[%s3271_s1 + $0x488] sm:$0xff] }
  0x79   : > { %1005 = vmatpush.msrb.mxu2 %v463_v30  ;;  %1024 = vmatpush.msrb.mxu3 %v514_v31  ;;  %v475_v29 = vld [vmem:[%s3271_s1 + $0x788] sm:$0xff]  ;;  %v565_v30 = vld [vmem:[%s3271_s1 + $0xa58] sm:$0xff]  ;;  %v616_v31 = vld [vmem:[%s3271_s1 + $0xbf0] sm:$0xff] }
  0x7a   : > { %966 = vmatpush.msrb.mxu0 %v364_v32  ;;  %985 = vmatpush.msrb.mxu1 %v415_v33  ;;  %v661_v32 = vld [vmem:[%s3271_s1 + $0xd58] sm:$0xff]  ;;  %v712_v33 = vld [vmem:[%s3271_s1 + $0xef0] sm:$0xff] }
  0x7b   : > { %1006 = vmatpush.msrb.mxu2 %v460_v34  ;;  %1025 = vmatpush.msrb.mxu3 %v511_v35  ;;  %v613_v34 = vld [vmem:[%s3271_s1 + $0xbd8] sm:$0xff]  ;;  %v658_v35 = vld [vmem:[%s3271_s1 + $0xd40] sm:$0xff] }
  0x7c   : > { %967 = vmatpush.msrb.mxu0 %v361_v36  ;;  %986 = vmatpush.msrb.mxu1 %v412_v37  ;;  %v709_v36 = vld [vmem:[%s3271_s1 + $0xed8] sm:$0xff]  ;;  %v559_v37 = vld [vmem:[%s3271_s1 + $0xa28] sm:$0xff] }
  0x7d   : > { %1007 = vmatpush.msrb.mxu2 %v457_v38  ;;  %1026 = vmatpush.msrb.mxu3 %v508_v39  ;;  %v610_v38 = vld [vmem:[%s3271_s1 + $0xbc0] sm:$0xff] }
  0x7e   : > { %968 = vmatpush.msrb.mxu0 %v358_v40  ;;  %987 = vmatpush.msrb.mxu1 %v409_v41  ;;  %v706_v39 = vld [vmem:[%s3271_s1 + $0xec0] sm:$0xff]  ;;  %v556_v40 = vld [vmem:[%s3271_s1 + $0xa10] sm:$0xff]  ;;  %v607_v41 = vld [vmem:[%s3271_s1 + $0xba8] sm:$0xff] }
  0x7f   : > { %1008 = vmatpush.msrb.mxu2 %v454_v42  ;;  %1027 = vmatpush.msrb.mxu3 %v505_v43  ;;  %v652_v42 = vld [vmem:[%s3271_s1 + $0xd10] sm:$0xff]  ;;  %v703_v43 = vld [vmem:[%s3271_s1 + $0xea8] sm:$0xff] }
  0x80   : > { %969 = vmatpush.msrb.mxu0 %v355_v44  ;;  %988 = vmatpush.msrb.mxu1 %v406_v45  ;;  %v553_v44 = vld [vmem:[%s3271_s1 + $0x9f8] sm:$0xff]  ;;  %v604_v45 = vld [vmem:[%s3271_s1 + $0xb90] sm:$0xff] }
  0x81   : > { %1009 = vmatpush.msrb.mxu2 %v451_v46  ;;  %1028 = vmatpush.msrb.mxu3 %v502_v47  ;;  %v649_v46 = vld [vmem:[%s3271_s1 + $0xcf8] sm:$0xff]  ;;  %v700_v47 = vld [vmem:[%s3271_s1 + $0xe90] sm:$0xff] }
  0x82   : > { %970 = vmatpush.msrb.mxu0 %v352_v48  ;;  %989 = vmatpush.msrb.mxu1 %v403_v49  ;;  %v550_v48 = vld [vmem:[%s3271_s1 + $0x9e0] sm:$0xff]  ;;  %v601_v49 = vld [vmem:[%s3271_s1 + $0xb78] sm:$0xff] }
  0x83   : > { %1010 = vmatpush.msrb.mxu2 %v448_v50  ;;  %1029 = vmatpush.msrb.mxu3 %v499_v51  ;;  %v646_v50 = vld [vmem:[%s3271_s1 + $0xce0] sm:$0xff]  ;;  %v697_v51 = vld [vmem:[%s3271_s1 + $0xe78] sm:$0xff] }
  0x84   : > { %971 = vmatpush.msrb.mxu0 %v349_v52  ;;  %990 = vmatpush.msrb.mxu1 %v400_v53  ;;  %v547_v52 = vld [vmem:[%s3271_s1 + $0x9c8] sm:$0xff]  ;;  %v598_v53 = vld [vmem:[%s3271_s1 + $0xb60] sm:$0xff] }
  0x85   : > { %1011 = vmatpush.msrb.mxu2 %v445_v54  ;;  %1030 = vmatpush.msrb.mxu3 %v496_v55  ;;  %v643_v54 = vld [vmem:[%s3271_s1 + $0xcc8] sm:$0xff]  ;;  %v694_v55 = vld [vmem:[%s3271_s1 + $0xe60] sm:$0xff] }
  0x86   : > { %972 = vmatpush.msrb.mxu0 %v346_v56  ;;  %991 = vmatpush.msrb.mxu1 %v397_v57  ;;  %v544_v56 = vld [vmem:[%s3271_s1 + $0x9b0] sm:$0xff]  ;;  %v595_v57 = vld [vmem:[%s3271_s1 + $0xb48] sm:$0xff] }
  0x87   : > { %1012 = vmatpush.msrb.mxu2 %v442_v59  ;;  %1031 = vmatpush.msrb.mxu3 %v493_v60  ;;  %v640_v59 = vld [vmem:[%s3271_s1 + $0xcb0] sm:$0xff]  ;;  %v691_v60 = vld [vmem:[%s3271_s1 + $0xe48] sm:$0xff] }
  0x88   : > { %973 = vmatpush.msrb.mxu0 %v343_v61  ;;  %992 = vmatpush.msrb.mxu1 %v394_v62  ;;  %v541_v61 = vld [vmem:[%s3271_s1 + $0x998] sm:$0xff]  ;;  %v592_v62 = vld [vmem:[%s3271_s1 + $0xb30] sm:$0xff] }
  0x89   : > { %1013 = vmatpush.msrb.mxu2 %v439_v1  ;;  %1032 = vmatpush.msrb.mxu3 %v490_v2  ;;  %v637_v1 = vld [vmem:[%s3271_s1 + $0xc98] sm:$0xff]  ;;  %v688_v2 = vld [vmem:[%s3271_s1 + $0xe30] sm:$0xff] }
  0x8a   : > { %974 = vmatpush.msrb.mxu0 %v340_v3  ;;  %993 = vmatpush.msrb.mxu1 %v391_v4  ;;  %v538_v3 = vld [vmem:[%s3271_s1 + $0x980] sm:$0xff]  ;;  %v589_v4 = vld [vmem:[%s3271_s1 + $0xb18] sm:$0xff] }
  0x8b   : > { %1014 = vmatpush.msrb.mxu2 %v436_v6  ;;  %1033 = vmatpush.msrb.mxu3 %v487_v7  ;;  %v634_v6 = vld [vmem:[%s3271_s1 + $0xc80] sm:$0xff]  ;;  %v685_v7 = vld [vmem:[%s3271_s1 + $0xe18] sm:$0xff] }
  0x8c   : > { %975 = vmatpush.msrb.mxu0 %v337_v8  ;;  %994 = vmatpush.msrb.mxu1 %v388_v9  ;;  %v535_v8 = vld [vmem:[%s3271_s1 + $0x968] sm:$0xff]  ;;  %v586_v9 = vld [vmem:[%s3271_s1 + $0xb00] sm:$0xff] }
  0x8d   : > { %1015 = vmatpush.msrb.mxu2 %v433_v11  ;;  %1034 = vmatpush.msrb.mxu3 %v484_v12  ;;  %v631_v11 = vld [vmem:[%s3271_s1 + $0xc68] sm:$0xff]  ;;  %v682_v12 = vld [vmem:[%s3271_s1 + $0xe00] sm:$0xff] }
  0x8e   : > { %976 = vmatpush.msrb.mxu0 %v334_v13  ;;  %995 = vmatpush.msrb.mxu1 %v385_v15  ;;  %v532_v13 = vld [vmem:[%s3271_s1 + $0x950] sm:$0xff]  ;;  %v583_v15 = vld [vmem:[%s3271_s1 + $0xae8] sm:$0xff] }
  0x8f   : > { %1016 = vmatpush.msrb.mxu2 %v430_v17  ;;  %1035 = vmatpush.msrb.mxu3 %v481_v18  ;;  %v628_v17 = vld [vmem:[%s3271_s1 + $0xc50] sm:$0xff]  ;;  %v679_v18 = vld [vmem:[%s3271_s1 + $0xde8] sm:$0xff] }
  0x90   : > { %977 = vmatpush.msrb.mxu0 %v331_v21  ;;  %996 = vmatpush.msrb.mxu1 %v382_v22  ;;  %v529_v21 = vld [vmem:[%s3271_s1 + $0x938] sm:$0xff]  ;;  %v580_v22 = vld [vmem:[%s3271_s1 + $0xad0] sm:$0xff] }
  0x91   : > { %1017 = vmatpush.msrb.mxu2 %v427_v23  ;;  %1036 = vmatpush.msrb.mxu3 %v478_v24  ;;  %v625_v23 = vld [vmem:[%s3271_s1 + $0xc38] sm:$0xff]  ;;  %v526_v24 = vld [vmem:[%s3271_s1 + $0x920] sm:$0xff] }
  0x92   : > { %938 = vmatmul.f32.vlgmr.msra.gmra.mxu2 %v2062_v63  ;;  %1042 = vmatpush.msra.mxu0 %v568_v26  ;;  %v562_v63 = vld [vmem:[%s3271_s1 + $0xa40] sm:$0xff]  ;;  %v577_v26 = vld [vmem:[%s3271_s1 + $0xab8] sm:$0xff] }
  0x93   : > { %1082 = vmatpush.msra.mxu2 %v664_v27  ;;  %997 = vmatpush.msrb.mxu1 %v379_v28  ;;  %v673_v27 = vld [vmem:[%s3271_s1 + $0xdb8] sm:$0xff]  ;;  %v574_v28 = vld [vmem:[%s3271_s1 + $0xaa0] sm:$0xff] }
  0x94   : > { %1037 = vmatpush.msrb.mxu3 %v475_v29  ;;  %1043 = vmatpush.msra.mxu0 %v565_v30  ;;  %v619_v29 = vld [vmem:[%s3271_s1 + $0xc08] sm:$0xff]  ;;  %v670_v30 = vld [vmem:[%s3271_s1 + $0xda0] sm:$0xff] }
  0x95   : > { %958 = vmatmul.f32.vlgmr.msra.gmra.mxu3 %v2082_v5  ;;  %1062 = vmatpush.msra.mxu1 %v616_v31  ;;  %v655_v5 = vld [vmem:[%s3271_s1 + $0xd28] sm:$0xff] }
  0x96   : > { %1083 = vmatpush.msra.mxu2 %v661_v32  ;;  %1102 = vmatpush.msra.mxu3 %v712_v33  ;;  %v571_v31 = vld [vmem:[%s3271_s1 + $0xa88] sm:$0xff]  ;;  %v278_v33 = vld [vmem:[%s3271_s1 + $0x160] sm:$0xff] }
  0x97   : > { %1044 = vmatpush.msra.mxu0 %v562_v63  ;;  %1063 = vmatpush.msra.mxu1 %v613_v34  ;;  %v667_v32 = vld [vmem:[%s3271_s1 + $0xd88] sm:$0xff]  ;;  %v329_v63 = vld [vmem:[%s3271_s1 + $0x2f8] sm:$0xff] }
  0x98   : > { %1084 = vmatpush.msra.mxu2 %v658_v35  ;;  %1103 = vmatpush.msra.mxu3 %v709_v36  ;;  %v377_v34 = vld [vmem:[%s3271_s1 + $0x478] sm:$0xff]  ;;  %v326_v35 = vld [vmem:[%s3271_s1 + $0x2e0] sm:$0xff] }
  0x99   : > { %1045 = vmatpush.msra.mxu0 %v559_v37  ;;  %1064 = vmatpush.msra.mxu1 %v610_v38  ;;  %v374_v36 = vld [vmem:[%s3271_s1 + $0x460] sm:$0xff]  ;;  %v323_v37 = vld [vmem:[%s3271_s1 + $0x2c8] sm:$0xff] }
  0x9a   : > { %1085 = vmatpush.msra.mxu2 %v655_v5  ;;  %1104 = vmatpush.msra.mxu3 %v706_v39  ;;  %v371_v38 = vld [vmem:[%s3271_s1 + $0x448] sm:$0xff]  ;;  %v422_v5 = vld [vmem:[%s3271_s1 + $0x5e0] sm:$0xff]  ;;  %v320_v39 = vld [vmem:[%s3271_s1 + $0x2b0] sm:$0xff] }
  0x9b   : > { %1046 = vmatpush.msra.mxu0 %v556_v40  ;;  %1065 = vmatpush.msra.mxu1 %v607_v41  ;;  %v368_v40 = vld [vmem:[%s3271_s1 + $0x430] sm:$0xff]  ;;  %v419_v41 = vld [vmem:[%s3271_s1 + $0x5c8] sm:$0xff] }
  0x9c   : > { %1086 = vmatpush.msra.mxu2 %v652_v42  ;;  %1105 = vmatpush.msra.mxu3 %v703_v43  ;;  %v266_v42 = vld [vmem:[%s3271_s1 + $0x100] sm:$0xff]  ;;  %v317_v43 = vld [vmem:[%s3271_s1 + $0x298] sm:$0xff] }
  0x9d   : > { %1047 = vmatpush.msra.mxu0 %v553_v44  ;;  %1066 = vmatpush.msra.mxu1 %v604_v45  ;;  %v365_v44 = vld [vmem:[%s3271_s1 + $0x418] sm:$0xff]  ;;  %v416_v45 = vld [vmem:[%s3271_s1 + $0x5b0] sm:$0xff] }
  0x9e   : > { %1087 = vmatpush.msra.mxu2 %v649_v46  ;;  %1106 = vmatpush.msra.mxu3 %v700_v47  ;;  %v263_v46 = vld [vmem:[%s3271_s1 + $0xe8] sm:$0xff]  ;;  %v314_v47 = vld [vmem:[%s3271_s1 + $0x280] sm:$0xff] }
  0x9f   : > { %1048 = vmatpush.msra.mxu0 %v550_v48  ;;  %1067 = vmatpush.msra.mxu1 %v601_v49  ;;  %v362_v48 = vld [vmem:[%s3271_s1 + $0x400] sm:$0xff]  ;;  %v413_v49 = vld [vmem:[%s3271_s1 + $0x598] sm:$0xff] }
  0xa0   : > { %1088 = vmatpush.msra.mxu2 %v646_v50  ;;  %1107 = vmatpush.msra.mxu3 %v697_v51  ;;  %v260_v50 = vld [vmem:[%s3271_s1 + $0xd0] sm:$0xff]  ;;  %v311_v51 = vld [vmem:[%s3271_s1 + $0x268] sm:$0xff] }
  0xa1   : > { %1049 = vmatpush.msra.mxu0 %v547_v52  ;;  %1068 = vmatpush.msra.mxu1 %v598_v53  ;;  %v359_v52 = vld [vmem:[%s3271_s1 + $0x3e8] sm:$0xff]  ;;  %v410_v53 = vld [vmem:[%s3271_s1 + $0x580] sm:$0xff] }
  0xa2   : > { %1089 = vmatpush.msra.mxu2 %v643_v54  ;;  %1108 = vmatpush.msra.mxu3 %v694_v55  ;;  %v257_v54 = vld [vmem:[%s3271_s1 + $0xb8] sm:$0xff]  ;;  %v308_v55 = vld [vmem:[%s3271_s1 + $0x250] sm:$0xff] }
  0xa3   : > { %1050 = vmatpush.msra.mxu0 %v544_v56  ;;  %1069 = vmatpush.msra.mxu1 %v595_v57  ;;  %v356_v56 = vld [vmem:[%s3271_s1 + $0x3d0] sm:$0xff]  ;;  %v407_v57 = vld [vmem:[%s3271_s1 + $0x568] sm:$0xff] }
  0xa4   : > { %1090 = vmatpush.msra.mxu2 %v640_v59  ;;  %1109 = vmatpush.msra.mxu3 %v691_v60  ;;  %v254_v59 = vld [vmem:[%s3271_s1 + $0xa0] sm:$0xff]  ;;  %v305_v60 = vld [vmem:[%s3271_s1 + $0x238] sm:$0xff] }
  0xa5   : > { %1051 = vmatpush.msra.mxu0 %v541_v61  ;;  %1070 = vmatpush.msra.mxu1 %v592_v62  ;;  %v353_v61 = vld [vmem:[%s3271_s1 + $0x3b8] sm:$0xff]  ;;  %v404_v62 = vld [vmem:[%s3271_s1 + $0x550] sm:$0xff] }
  0xa6   : > { %1091 = vmatpush.msra.mxu2 %v637_v1  ;;  %1110 = vmatpush.msra.mxu3 %v688_v2  ;;  %v251_v1 = vld [vmem:[%s3271_s1 + $0x88] sm:$0xff]  ;;  %v302_v2 = vld [vmem:[%s3271_s1 + $0x220] sm:$0xff] }
  0xa7   : > { %1052 = vmatpush.msra.mxu0 %v538_v3  ;;  %1071 = vmatpush.msra.mxu1 %v589_v4  ;;  %v350_v3 = vld [vmem:[%s3271_s1 + $0x3a0] sm:$0xff]  ;;  %v401_v4 = vld [vmem:[%s3271_s1 + $0x538] sm:$0xff] }
  0xa8   : > { %1092 = vmatpush.msra.mxu2 %v634_v6  ;;  %1111 = vmatpush.msra.mxu3 %v685_v7  ;;  %v248_v6 = vld [vmem:[%s3271_s1 + $0x70] sm:$0xff]  ;;  %v299_v7 = vld [vmem:[%s3271_s1 + $0x208] sm:$0xff] }
  0xa9   : > { %1053 = vmatpush.msra.mxu0 %v535_v8  ;;  %1072 = vmatpush.msra.mxu1 %v586_v9  ;;  %v347_v8 = vld [vmem:[%s3271_s1 + $0x388] sm:$0xff]  ;;  %v398_v9 = vld [vmem:[%s3271_s1 + $0x520] sm:$0xff] }
  0xaa   : > { %1093 = vmatpush.msra.mxu2 %v631_v11  ;;  %1112 = vmatpush.msra.mxu3 %v682_v12  ;;  %v245_v11 = vld [vmem:[%s3271_s1 + $0x58] sm:$0xff]  ;;  %v296_v12 = vld [vmem:[%s3271_s1 + $0x1f0] sm:$0xff] }
  0xab   : > { %1018 = vmatmul.f32.vlgmr.msrb.gmra.mxu2 %v2126_v19  ;;  %1054 = vmatpush.msra.mxu0 %v532_v13  ;;  %v676_v19 = vld [vmem:[%s3271_s1 + $0xdd0] sm:$0xff] }
  0xac   : > { %1073 = vmatpush.msra.mxu1 %v583_v15  ;;  %1094 = vmatpush.msra.mxu2 %v628_v17  ;;  %v344_v13 = vld [vmem:[%s3271_s1 + $0x370] sm:$0xff]  ;;  %v395_v15 = vld [vmem:[%s3271_s1 + $0x508] sm:$0xff]  ;;  %v242_v17 = vld [vmem:[%s3271_s1 + $0x40] sm:$0xff] }
  0xad   : > { %1113 = vmatpush.msra.mxu3 %v679_v18  ;;  %978 = vmatmul.f32.vlgmr.msrb.gmra.mxu0 %v2047_v58  ;;  %v622_v58 = vld [vmem:[%s3271_s1 + $0xc20] sm:$0xff]  ;;  %v293_v18 = vld [vmem:[%s3271_s1 + $0x1d8] sm:$0xff] }
  0xae   : > { %1038 = vmatmul.f32.vlgmr.msrb.gmra.mxu3 %v2146_v25  ;;  %1055 = vmatpush.msra.mxu0 %v529_v21  ;;  %v523_v25 = vld [vmem:[%s3271_s1 + $0x908] sm:$0xff]  ;;  %v341_v21 = vld [vmem:[%s3271_s1 + $0x358] sm:$0xff] }
  0xaf   : > { %1074 = vmatpush.msra.mxu1 %v580_v22  ;;  %1095 = vmatpush.msra.mxu2 %v625_v23  ;;  %v392_v22 = vld [vmem:[%s3271_s1 + $0x4f0] sm:$0xff]  ;;  %v239_v23 = vld [vmem:[%s3271_s1 + $0x28] sm:$0xff] }
  0xb0   : > { %1114 = vmatpush.msra.mxu3 %v676_v19  ;;  %998 = vmatmul.f32.vlgmr.msrb.gmra.mxu1 %v2066_v0  ;;  %v281_v0 = vld [vmem:[%s3271_s1 + $0x178] sm:$0xff]  ;;  %v290_v19 = vld [vmem:[%s3271_s1 + $0x1c0] sm:$0xff] }
  0xb1   : > { %1056 = vmatpush.msra.mxu0 %v526_v24  ;;  %1075 = vmatpush.msra.mxu1 %v577_v26  ;;  %v338_v24 = vld [vmem:[%s3271_s1 + $0x340] sm:$0xff]  ;;  %v389_v26 = vld [vmem:[%s3271_s1 + $0x4d8] sm:$0xff] }
  0xb2   : > { %1096 = vmatpush.msra.mxu2 %v622_v58  ;;  %1115 = vmatpush.msra.mxu3 %v673_v27  ;;  %v236_v58 = vld [vmem:[%s3271_s1 + $0x10] sm:$0xff]  ;;  %v287_v27 = vld [vmem:[%s3271_s1 + $0x1a8] sm:$0xff] }
  0xb3   : > { %1057 = vmatpush.msra.mxu0 %v523_v25  ;;  %1076 = vmatpush.msra.mxu1 %v574_v28  ;;  %v473_v25 = vld [vmem:[%s3271_s1 + $0x778] sm:$0xff]  ;;  %v335_v28 = vld [vmem:[%s3271_s1 + $0x328] sm:$0xff] }
  0xb4   : > { %1097 = vmatpush.msra.mxu2 %v619_v29  ;;  %1116 = vmatpush.msra.mxu3 %v670_v30  ;;  %v284_v29 = vld [vmem:[%s3271_s1 + $0x190] sm:$0xff]  ;;  %v386_v30 = vld [vmem:[%s3271_s1 + $0x4c0] sm:$0xff] }
  0xb5   : > { %1098 = vmatmul.f32.vlgmr.msra.gmra.mxu2 %v2283_v10  ;;  %1122 = vmatpush.msrb.mxu0 %v281_v0  ;;  %v275_v10 = vld [vmem:[%s3271_s1 + $0x148] sm:$0xff]  ;;  %v470_v0 = vld [vmem:[%s3271_s1 + $0x760] sm:$0xff] }
  0xb6   : > { %1077 = vmatpush.msra.mxu1 %v571_v31  ;;  %1117 = vmatpush.msra.mxu3 %v667_v32  ;;  %v521_v31 = vld [vmem:[%s3271_s1 + $0x8f8] sm:$0xff]  ;;  %v332_v32 = vld [vmem:[%s3271_s1 + $0x310] sm:$0xff] }
  0xb7   : > { %1058 = vmatmul.f32.vlgmr.msra.gmra.mxu0 %v2111_v14  ;;  %1118 = vmatmul.f32.vlgmr.msra.gmra.mxu3 %v2298_v16  ;;  %v425_v14 = vld [vmem:[%s3271_s1 + $0x5f8] sm:$0xff]  ;;  %v272_v16 = vld [vmem:[%s3271_s1 + $0x130] sm:$0xff] }
  0xb8   : > { %1123 = vmatpush.msrb.mxu0 %v278_v33  ;;  %1142 = vmatpush.msrb.mxu1 %v329_v63  ;;  %v383_v33 = vld [vmem:[%s3271_s1 + $0x4a8] sm:$0xff] }
  0xb9   : > { %1078 = vmatmul.f32.vlgmr.msra.gmra.mxu1 %v2130_v20  ;;  %1162 = vmatpush.msrb.mxu2 %v377_v34  ;;  %v269_v20 = vld [vmem:[%s3271_s1 + $0x118] sm:$0xff]  ;;  %v467_v63 = vld [vmem:[%s3271_s1 + $0x748] sm:$0xff]  ;;  %v518_v34 = vld [vmem:[%s3271_s1 + $0x8e0] sm:$0xff] }
  0xba   : > { %1124 = vmatpush.msrb.mxu0 %v275_v10  ;;  %1143 = vmatpush.msrb.mxu1 %v326_v35  ;;  %v569_v10 = vld [vmem:[%s3271_s1 + $0xa78] sm:$0xff]  ;;  %v380_v35 = vld [vmem:[%s3271_s1 + $0x490] sm:$0xff] }
  0xbb   : > { %1163 = vmatpush.msrb.mxu2 %v374_v36  ;;  %1182 = vmatpush.msrb.mxu3 %v425_v14  ;;  %v464_v36 = vld [vmem:[%s3271_s1 + $0x730] sm:$0xff]  ;;  %v515_v14 = vld [vmem:[%s3271_s1 + $0x8c8] sm:$0xff] }
  0xbc   : > { %1125 = vmatpush.msrb.mxu0 %v272_v16  ;;  %1144 = vmatpush.msrb.mxu1 %v323_v37  ;;  %v566_v16 = vld [vmem:[%s3271_s1 + $0xa60] sm:$0xff]  ;;  %v617_v37 = vld [vmem:[%s3271_s1 + $0xbf8] sm:$0xff] }
  0xbd   : > { %1164 = vmatpush.msrb.mxu2 %v371_v38  ;;  %1183 = vmatpush.msrb.mxu3 %v422_v5  ;;  %v461_v38 = vld [vmem:[%s3271_s1 + $0x718] sm:$0xff]  ;;  %v512_v5 = vld [vmem:[%s3271_s1 + $0x8b0] sm:$0xff] }
  0xbe   : > { %1126 = vmatpush.msrb.mxu0 %v269_v20  ;;  %1145 = vmatpush.msrb.mxu1 %v320_v39  ;;  %v563_v20 = vld [vmem:[%s3271_s1 + $0xa48] sm:$0xff]  ;;  %v614_v39 = vld [vmem:[%s3271_s1 + $0xbe0] sm:$0xff] }
  0xbf   : > { %1165 = vmatpush.msrb.mxu2 %v368_v40  ;;  %1184 = vmatpush.msrb.mxu3 %v419_v41  ;;  %v458_v40 = vld [vmem:[%s3271_s1 + $0x700] sm:$0xff]  ;;  %v509_v41 = vld [vmem:[%s3271_s1 + $0x898] sm:$0xff] }
  0xc0   : > { %1127 = vmatpush.msrb.mxu0 %v266_v42  ;;  %1146 = vmatpush.msrb.mxu1 %v317_v43  ;;  %v560_v42 = vld [vmem:[%s3271_s1 + $0xa30] sm:$0xff]  ;;  %v611_v43 = vld [vmem:[%s3271_s1 + $0xbc8] sm:$0xff] }
  0xc1   : > { %1166 = vmatpush.msrb.mxu2 %v365_v44  ;;  %1185 = vmatpush.msrb.mxu3 %v416_v45  ;;  %v455_v44 = vld [vmem:[%s3271_s1 + $0x6e8] sm:$0xff]  ;;  %v506_v45 = vld [vmem:[%s3271_s1 + $0x880] sm:$0xff] }
  0xc2   : > { %1128 = vmatpush.msrb.mxu0 %v263_v46  ;;  %1147 = vmatpush.msrb.mxu1 %v314_v47  ;;  %v557_v46 = vld [vmem:[%s3271_s1 + $0xa18] sm:$0xff]  ;;  %v608_v47 = vld [vmem:[%s3271_s1 + $0xbb0] sm:$0xff] }
  0xc3   : > { %1167 = vmatpush.msrb.mxu2 %v362_v48  ;;  %1186 = vmatpush.msrb.mxu3 %v413_v49  ;;  %v452_v48 = vld [vmem:[%s3271_s1 + $0x6d0] sm:$0xff]  ;;  %v503_v49 = vld [vmem:[%s3271_s1 + $0x868] sm:$0xff] }
  0xc4   : > { %1129 = vmatpush.msrb.mxu0 %v260_v50  ;;  %1148 = vmatpush.msrb.mxu1 %v311_v51  ;;  %v554_v50 = vld [vmem:[%s3271_s1 + $0xa00] sm:$0xff]  ;;  %v605_v51 = vld [vmem:[%s3271_s1 + $0xb98] sm:$0xff] }
  0xc5   : > { %1168 = vmatpush.msrb.mxu2 %v359_v52  ;;  %1187 = vmatpush.msrb.mxu3 %v410_v53  ;;  %v449_v52 = vld [vmem:[%s3271_s1 + $0x6b8] sm:$0xff]  ;;  %v500_v53 = vld [vmem:[%s3271_s1 + $0x850] sm:$0xff] }
  0xc6   : > { %1130 = vmatpush.msrb.mxu0 %v257_v54  ;;  %1149 = vmatpush.msrb.mxu1 %v308_v55  ;;  %v551_v54 = vld [vmem:[%s3271_s1 + $0x9e8] sm:$0xff]  ;;  %v602_v55 = vld [vmem:[%s3271_s1 + $0xb80] sm:$0xff] }
  0xc7   : > { %1169 = vmatpush.msrb.mxu2 %v356_v56  ;;  %1188 = vmatpush.msrb.mxu3 %v407_v57  ;;  %v446_v56 = vld [vmem:[%s3271_s1 + $0x6a0] sm:$0xff]  ;;  %v497_v57 = vld [vmem:[%s3271_s1 + $0x838] sm:$0xff] }
  0xc8   : > { %1131 = vmatpush.msrb.mxu0 %v254_v59  ;;  %1150 = vmatpush.msrb.mxu1 %v305_v60  ;;  %v548_v59 = vld [vmem:[%s3271_s1 + $0x9d0] sm:$0xff]  ;;  %v599_v60 = vld [vmem:[%s3271_s1 + $0xb68] sm:$0xff] }
  0xc9   : > { %1170 = vmatpush.msrb.mxu2 %v353_v61  ;;  %1189 = vmatpush.msrb.mxu3 %v404_v62  ;;  %v443_v61 = vld [vmem:[%s3271_s1 + $0x688] sm:$0xff]  ;;  %v494_v62 = vld [vmem:[%s3271_s1 + $0x820] sm:$0xff] }
  0xca   : > { %1132 = vmatpush.msrb.mxu0 %v251_v1  ;;  %1151 = vmatpush.msrb.mxu1 %v302_v2  ;;  %v545_v1 = vld [vmem:[%s3271_s1 + $0x9b8] sm:$0xff]  ;;  %v596_v2 = vld [vmem:[%s3271_s1 + $0xb50] sm:$0xff] }
  0xcb   : > { %1171 = vmatpush.msrb.mxu2 %v350_v3  ;;  %1190 = vmatpush.msrb.mxu3 %v401_v4  ;;  %v440_v3 = vld [vmem:[%s3271_s1 + $0x670] sm:$0xff]  ;;  %v491_v4 = vld [vmem:[%s3271_s1 + $0x808] sm:$0xff] }
  0xcc   : > { %1133 = vmatpush.msrb.mxu0 %v248_v6  ;;  %1152 = vmatpush.msrb.mxu1 %v299_v7  ;;  %v542_v6 = vld [vmem:[%s3271_s1 + $0x9a0] sm:$0xff]  ;;  %v593_v7 = vld [vmem:[%s3271_s1 + $0xb38] sm:$0xff] }
  0xcd   : > { %1172 = vmatpush.msrb.mxu2 %v347_v8  ;;  %1191 = vmatpush.msrb.mxu3 %v398_v9  ;;  %v437_v8 = vld [vmem:[%s3271_s1 + $0x658] sm:$0xff]  ;;  %v488_v9 = vld [vmem:[%s3271_s1 + $0x7f0] sm:$0xff] }
  0xce   : > { %1134 = vmatpush.msrb.mxu0 %v245_v11  ;;  %1153 = vmatpush.msrb.mxu1 %v296_v12  ;;  %v539_v11 = vld [vmem:[%s3271_s1 + $0x988] sm:$0xff]  ;;  %v590_v12 = vld [vmem:[%s3271_s1 + $0xb20] sm:$0xff] }
  0xcf   : > { %1173 = vmatpush.msrb.mxu2 %v344_v13  ;;  %1192 = vmatpush.msrb.mxu3 %v395_v15  ;;  %v434_v13 = vld [vmem:[%s3271_s1 + $0x640] sm:$0xff]  ;;  %v485_v15 = vld [vmem:[%s3271_s1 + $0x7d8] sm:$0xff] }
  0xd0   : > { %1135 = vmatpush.msrb.mxu0 %v242_v17  ;;  %1154 = vmatpush.msrb.mxu1 %v293_v18  ;;  %v536_v17 = vld [vmem:[%s3271_s1 + $0x970] sm:$0xff]  ;;  %v587_v18 = vld [vmem:[%s3271_s1 + $0xb08] sm:$0xff] }
  0xd1   : > { %1174 = vmatpush.msrb.mxu2 %v341_v21  ;;  %1193 = vmatpush.msrb.mxu3 %v392_v22  ;;  %v431_v21 = vld [vmem:[%s3271_s1 + $0x628] sm:$0xff]  ;;  %v482_v22 = vld [vmem:[%s3271_s1 + $0x7c0] sm:$0xff] }
  0xd2   : > { %1136 = vmatpush.msrb.mxu0 %v239_v23  ;;  %1155 = vmatpush.msrb.mxu1 %v290_v19  ;;  %v584_v23 = vld [vmem:[%s3271_s1 + $0xaf0] sm:$0xff] }
  0xd3   : > { %1175 = vmatpush.msrb.mxu2 %v338_v24  ;;  %1194 = vmatpush.msrb.mxu3 %v389_v26  ;;  %v428_v19 = vld [vmem:[%s3271_s1 + $0x610] sm:$0xff]  ;;  %v479_v24 = vld [vmem:[%s3271_s1 + $0x7a8] sm:$0xff]  ;;  %v533_v26 = vld [vmem:[%s3271_s1 + $0x958] sm:$0xff] }
  0xd4   : > { %1137 = vmatpush.msrb.mxu0 %v236_v58  ;;  %1156 = vmatpush.msrb.mxu1 %v287_v27  ;;  %v1603_v58 = vld [vmem:[%s2032_s22 + $0x10] sm:$0xff]  ;;  %v665_v27 = vld [vmem:[%s3271_s1 + $0xd78] sm:$0xff] }
  0xd5   : > { %1176 = vmatpush.msrb.mxu2 %v335_v28  ;;  %1195 = vmatpush.msrb.mxu3 %v386_v30  ;;  %v530_v28 = vld [vmem:[%s3271_s1 + $0x940] sm:$0xff]  ;;  %v581_v30 = vld [vmem:[%s3271_s1 + $0xad8] sm:$0xff] }
  0xd6   : > { %1202 = vmatpush.msra.mxu0 %v473_v25  ;;  %1157 = vmatpush.msrb.mxu1 %v284_v29  ;;  %v476_v25 = vld [vmem:[%s3271_s1 + $0x790] sm:$0xff]  ;;  %v1604_v29 = vld [vmem:[%s2032_s22] sm:$0xff] }
  0xd7   : > { %1177 = vmatpush.msrb.mxu2 %v332_v32  ;;  %1196 = vmatpush.msrb.mxu3 %v383_v33  ;;  %v713_v32 = vld [vmem:[%s3271_s1 + $0xef8] sm:$0xff]  ;;  %v527_v33 = vld [vmem:[%s3271_s1 + $0x928] sm:$0xff] }
  0xd8   : > { %1203 = vmatpush.msra.mxu0 %v470_v0  ;;  %1222 = vmatpush.msra.mxu1 %v521_v31  ;;  %v1605_v0 = vld [vmem:[%s2032_s22 + $0x18] sm:$0xff]  ;;  %v662_v31 = vld [vmem:[%s3271_s1 + $0xd60] sm:$0xff] }
  0xd9   : > { %1242 = vmatpush.msra.mxu2 %v569_v10  ;;  %1197 = vmatpush.msrb.mxu3 %v380_v35  ;;  %v659_v10 = vld [vmem:[%s3271_s1 + $0xd48] sm:$0xff]  ;;  %v710_v35 = vld [vmem:[%s3271_s1 + $0xee0] sm:$0xff] }
  0xda   : > { %1204 = vmatpush.msra.mxu0 %v467_v63  ;;  %1223 = vmatpush.msra.mxu1 %v518_v34  ;;  %v578_v63 = vld [vmem:[%s3271_s1 + $0xac0] sm:$0xff]  ;;  %v1606_v34 = vld [vmem:[%s2032_s22 + $0x8] sm:$0xff] }
  0xdb   : > { %1243 = vmatpush.msra.mxu2 %v566_v16  ;;  %1262 = vmatpush.msra.mxu3 %v617_v37  ;;  %v656_v16 = vld [vmem:[%s3271_s1 + $0xd30] sm:$0xff]  ;;  %v707_v37 = vld [vmem:[%s3271_s1 + $0xec8] sm:$0xff] }
  0xdc   : > { %1205 = vmatpush.msra.mxu0 %v464_v36  ;;  %1224 = vmatpush.msra.mxu1 %v515_v14  ;;  %v524_v36 = vld [vmem:[%s3271_s1 + $0x910] sm:$0xff]  ;;  %v575_v14 = vld [vmem:[%s3271_s1 + $0xaa8] sm:$0xff] }
  0xdd   : > { %1244 = vmatpush.msra.mxu2 %v563_v20  ;;  %1263 = vmatpush.msra.mxu3 %v614_v39  ;;  %v653_v20 = vld [vmem:[%s3271_s1 + $0xd18] sm:$0xff]  ;;  %v704_v39 = vld [vmem:[%s3271_s1 + $0xeb0] sm:$0xff] }
  0xde   : > { %1206 = vmatpush.msra.mxu0 %v461_v38  ;;  %1225 = vmatpush.msra.mxu1 %v512_v5  ;;  %v572_v38 = vld [vmem:[%s3271_s1 + $0xa90] sm:$0xff] }
  0xdf   : > { %1245 = vmatpush.msra.mxu2 %v560_v42  ;;  %1264 = vmatpush.msra.mxu3 %v611_v43  ;;  %v1607_v5 = vld [vmem:[%s2032_s22 + $0x30] sm:$0xff]  ;;  %v650_v42 = vld [vmem:[%s3271_s1 + $0xd00] sm:$0xff]  ;;  %v701_v43 = vld [vmem:[%s3271_s1 + $0xe98] sm:$0xff] }
  0xe0   : > { %1207 = vmatpush.msra.mxu0 %v458_v40  ;;  %1226 = vmatpush.msra.mxu1 %v509_v41  ;;  %v1608_v40 = vld [vmem:[%s2032_s22 + $0x20] sm:$0xff]  ;;  %v1609_v41 = vld [vmem:[%s2032_s22 + $0x38] sm:$0xff] }
  0xe1   : > { %1246 = vmatpush.msra.mxu2 %v557_v46  ;;  %1265 = vmatpush.msra.mxu3 %v608_v47  ;;  %v698_v46 = vld [vmem:[%s3271_s1 + $0xe80] sm:$0xff]  ;;  %v644_v47 = vld [vmem:[%s3271_s1 + $0xcd0] sm:$0xff] }
  0xe2   : > { %1208 = vmatpush.msra.mxu0 %v455_v44  ;;  %1227 = vmatpush.msra.mxu1 %v506_v45  ;;  %v1610_v44 = vld [vmem:[%s2032_s22 + $0x28] sm:$0xff] }
  0xe3   : > { %1247 = vmatpush.msra.mxu2 %v554_v50  ;;  %1266 = vmatpush.msra.mxu3 %v605_v51  ;;  %v647_v45 = vld [vmem:[%s3271_s1 + $0xce8] sm:$0xff]  ;;  %v692_v50 = vld [vmem:[%s3271_s1 + $0xe50] sm:$0xff]  ;;  %v638_v51 = vld [vmem:[%s3271_s1 + $0xca0] sm:$0xff] }
  0xe4   : > { %1209 = vmatpush.msra.mxu0 %v452_v48  ;;  %1228 = vmatpush.msra.mxu1 %v503_v49  ;;  %v695_v48 = vld [vmem:[%s3271_s1 + $0xe68] sm:$0xff]  ;;  %v641_v49 = vld [vmem:[%s3271_s1 + $0xcb8] sm:$0xff] }
  0xe5   : > { %1248 = vmatpush.msra.mxu2 %v551_v54  ;;  %1267 = vmatpush.msra.mxu3 %v602_v55  ;;  %v686_v54 = vld [vmem:[%s3271_s1 + $0xe20] sm:$0xff]  ;;  %v632_v55 = vld [vmem:[%s3271_s1 + $0xc70] sm:$0xff] }
  0xe6   : > { %1210 = vmatpush.msra.mxu0 %v449_v52  ;;  %1229 = vmatpush.msra.mxu1 %v500_v53  ;;  %v689_v52 = vld [vmem:[%s3271_s1 + $0xe38] sm:$0xff]  ;;  %v635_v53 = vld [vmem:[%s3271_s1 + $0xc88] sm:$0xff] }
  0xe7   : > { %1249 = vmatpush.msra.mxu2 %v548_v59  ;;  %1268 = vmatpush.msra.mxu3 %v599_v60  ;;  %v680_v59 = vld [vmem:[%s3271_s1 + $0xdf0] sm:$0xff]  ;;  %v626_v60 = vld [vmem:[%s3271_s1 + $0xc40] sm:$0xff] }
  0xe8   : > { %1211 = vmatpush.msra.mxu0 %v446_v56  ;;  %1230 = vmatpush.msra.mxu1 %v497_v57  ;;  %v683_v56 = vld [vmem:[%s3271_s1 + $0xe08] sm:$0xff]  ;;  %v629_v57 = vld [vmem:[%s3271_s1 + $0xc58] sm:$0xff] }
  0xe9   : > { %1250 = vmatpush.msra.mxu2 %v545_v1  ;;  %1269 = vmatpush.msra.mxu3 %v596_v2  ;;  %v674_v1 = vld [vmem:[%s3271_s1 + $0xdc0] sm:$0xff]  ;;  %v620_v2 = vld [vmem:[%s3271_s1 + $0xc10] sm:$0xff] }
  0xea   : > { %1212 = vmatpush.msra.mxu0 %v443_v61  ;;  %1231 = vmatpush.msra.mxu1 %v494_v62  ;;  %v677_v61 = vld [vmem:[%s3271_s1 + $0xdd8] sm:$0xff]  ;;  %v623_v62 = vld [vmem:[%s3271_s1 + $0xc28] sm:$0xff] }
  0xeb   : > { %1251 = vmatpush.msra.mxu2 %v542_v6  ;;  %1270 = vmatpush.msra.mxu3 %v593_v7  ;;  %v1611_v6 = vld [vmem:[%s2032_s22 + $0x40] sm:$0xff]  ;;  %v1612_v7 = vld [vmem:[%s2032_s22 + $0x48] sm:$0xff] }
  0xec   : > { %1213 = vmatpush.msra.mxu0 %v440_v3  ;;  %1232 = vmatpush.msra.mxu1 %v491_v4  ;;  %v671_v3 = vld [vmem:[%s3271_s1 + $0xda8] sm:$0xff]  ;;  %v668_v4 = vld [vmem:[%s3271_s1 + $0xd90] sm:$0xff] }
  0xed   : > { %1252 = vmatpush.msra.mxu2 %v539_v11  ;;  %1271 = vmatpush.msra.mxu3 %v590_v12  ;;  %v759_v11 = vpop.f32.mrf.mxu1  ;;  %v799_v12 = vpop.f32.mrf.mxu3 }
  0xee   : > { %1214 = vmatpush.msra.mxu0 %v437_v8  ;;  %1233 = vmatpush.msra.mxu1 %v488_v9  ;;  %v739_v8 = vpop.f32.mrf.mxu0  ;;  %v779_v9 = vpop.f32.mrf.mxu2 }
  0xef   : > { %1253 = vmatpush.msra.mxu2 %v536_v17  ;;  %1272 = vmatpush.msra.mxu3 %v587_v18 }
  0xf0   : > { %1215 = vmatpush.msra.mxu0 %v434_v13  ;;  %1234 = vmatpush.msra.mxu1 %v485_v15 }
  0xf1   : > { %1178 = vmatmul.f32.vlgmr.msrb.gmra.mxu2 %v1603_v58  ;;  %1273 = vmatpush.msra.mxu3 %v584_v23 }
  0xf2   : > { %1216 = vmatpush.msra.mxu0 %v431_v21  ;;  %1235 = vmatpush.msra.mxu1 %v482_v22  ;;  %v714_v21 = vld [vmem:[%s3272_s2] sm:$0x7] }
  0xf3   : > { %1254 = vmatpush.msra.mxu2 %v533_v26  ;;  %1138 = vmatmul.f32.vlgmr.msrb.gmra.mxu0 %v1604_v29  ;;  %v717_v22 = vperm.slane %v714_v21, 1 }
  0xf4   : > { %1217 = vmatpush.msra.mxu0 %v428_v19  ;;  %1236 = vmatpush.msra.mxu1 %v479_v24  ;;  %v716_v24 = vperm.slane %v714_v21, 0 }
  0xf5   : > { %1198 = vmatmul.f32.vlgmr.msrb.gmra.mxu3 %v1605_v0  ;;  %1255 = vmatpush.msra.mxu2 %v530_v28  ;;  %v839_v17 = vpop.f32.mrf.mxu1  ;;  %v879_v18 = vpop.f32.mrf.mxu3 }
  0xf6   : > { %1282 = vmatpush.msrb.mxu0 %v665_v27  ;;  %1237 = vmatpush.msra.mxu1 %v476_v25  ;;  %v819_v13 = vpop.f32.mrf.mxu0  ;;  %v859_v15 = vpop.f32.mrf.mxu2  ;;  %v740_v25 = vadd.f32 %v739_v8, %v716_v24 }
  0xf7   : > { %1274 = vmatpush.msra.mxu3 %v581_v30  ;;  %1158 = vmatmul.f32.vlgmr.msrb.gmra.mxu1 %v1606_v34 }
  0xf8   : > { %1283 = vmatpush.msrb.mxu0 %v662_v31  ;;  %1302 = vmatpush.msrb.mxu1 %v713_v32  ;;  %v760_v30 = vadd.f32 %v759_v11, %v740_v25 }
  0xf9   : > { %1256 = vmatpush.msra.mxu2 %v527_v33  ;;  %1275 = vmatpush.msra.mxu3 %v578_v63 }
  0xfa   : > { %1284 = vmatpush.msrb.mxu0 %v659_v10  ;;  %1303 = vmatpush.msrb.mxu1 %v710_v35  ;;  %v780_v32 = vadd.f32 %v779_v9, %v760_v30 }
  0xfb   : > { %1257 = vmatpush.msra.mxu2 %v524_v36  ;;  %1276 = vmatpush.msra.mxu3 %v575_v14 }
  0xfc   : > { %1258 = vmatmul.f32.vlgmr.msra.gmra.mxu2 %v1607_v5  ;;  %1285 = vmatpush.msrb.mxu0 %v656_v16  ;;  %v800_v34 = vadd.f32 %v799_v12, %v780_v32 }
  0xfd   : > { %1304 = vmatpush.msrb.mxu1 %v707_v37  ;;  %1277 = vmatpush.msra.mxu3 %v572_v38  ;;  %v919_v58 = vpop.f32.mrf.mxu1 }
  0xfe   : > { %1218 = vmatmul.f32.vlgmr.msra.gmra.mxu0 %v1608_v40  ;;  %1278 = vmatmul.f32.vlgmr.msra.gmra.mxu3 %v1609_v41  ;;  %v899_v23 = vpop.f32.mrf.mxu0  ;;  %v820_v36 = vadd.f32 %v819_v13, %v800_v34 }
  0xff   : > { %1286 = vmatpush.msrb.mxu0 %v653_v20  ;;  %1305 = vmatpush.msrb.mxu1 %v704_v39 }
 0x100   : > { %1238 = vmatmul.f32.vlgmr.msra.gmra.mxu1 %v1610_v44  ;;  %v840_v37 = vadd.f32 %v839_v17, %v820_v36 }
 0x101   : > { %1287 = vmatpush.msrb.mxu0 %v650_v42  ;;  %1306 = vmatpush.msrb.mxu1 %v701_v43 }
 0x102   : > { %v860_v20 = vadd.f32 %v859_v15, %v840_v37 }
 0x103   : > { %1288 = vmatpush.msrb.mxu0 %v647_v45  ;;  %1307 = vmatpush.msrb.mxu1 %v698_v46 }
 0x104   : > { %v880_v41 = vadd.f32 %v879_v18, %v860_v20 }
 0x105   : > { %1289 = vmatpush.msrb.mxu0 %v644_v47  ;;  %1308 = vmatpush.msrb.mxu1 %v695_v48 }
 0x106   : > { %v900_v44 = vadd.f32 %v899_v23, %v880_v41 }
 0x107   : > { %1290 = vmatpush.msrb.mxu0 %v641_v49  ;;  %1309 = vmatpush.msrb.mxu1 %v692_v50 }
 0x108   : > { %v3185_v46 = vadd.f32 %v919_v58, %v900_v44 }
 0x109   : > { %1291 = vmatpush.msrb.mxu0 %v638_v51  ;;  %1310 = vmatpush.msrb.mxu1 %v689_v52 }
 0x10a   : > { %v3191_v48 = vmul.f32 0.70710677, %v3185_v46 }
 0x10b   : > { %1292 = vmatpush.msrb.mxu0 %v635_v53  ;;  %1311 = vmatpush.msrb.mxu1 %v686_v54  ;;  %v718_v54 = vperm.slane %v714_v21, 2 }
 0x10c   : > { %v1328_v50 = vmul.f32 %v3191_v48, %v3191_v48 }
 0x10d   : > { %1293 = vmatpush.msrb.mxu0 %v632_v55  ;;  %1312 = vmatpush.msrb.mxu1 %v683_v56 }
 0x10e   : > { %v3199_v52 = vmin.f32 %v1328_v50, 16.0 }
 0x10f   : > { %1294 = vmatpush.msrb.mxu0 %v629_v57  ;;  %1313 = vmatpush.msrb.mxu1 %v680_v59 }
 0x110   : > { %v1341_v55 = vmul.f32 3.8918573e-05, %v3199_v52  ;;  %v1330_v25 = vmul.f32 2.1237322e-06, %v3199_v52 }
 0x111   : > { %1295 = vmatpush.msrb.mxu0 %v626_v60  ;;  %1314 = vmatpush.msrb.mxu1 %v677_v61 }
 0x112   : > { %v1342_v60 = vadd.f32 0.001143296, %v1341_v55  ;;  %v1331_v32 = vadd.f32 0.00028619796, %v1330_v25 }
 0x113   : > { %1296 = vmatpush.msrb.mxu0 %v623_v62  ;;  %1315 = vmatpush.msrb.mxu1 %v674_v1 }
 0x115   : > { %1297 = vmatpush.msrb.mxu0 %v620_v2  ;;  %1316 = vmatpush.msrb.mxu1 %v671_v3  ;;  %v939_v19 = vpop.f32.mrf.mxu2  ;;  %v1343_v2 = vmul.f32 %v1342_v60, %v3199_v52 }
 0x116   : > { %1298 = vmatmul.f32.vlgmr.msrb.gmra.mxu0 %v1611_v6  ;;  %v940_v26 = vadd.f32 %v939_v19, %v717_v22 }
 0x117   : > { %1317 = vmatpush.msrb.mxu1 %v668_v4 }
 0x118   : > { %1318 = vmatmul.f32.vlgmr.msrb.gmra.mxu1 %v1612_v7  ;;  %v959_v27 = vpop.f32.mrf.mxu3  ;;  %v1344_v7 = vadd.f32 0.014752088, %v1343_v2 }
 0x119   : > { %v960_v28 = vadd.f32 %v959_v27, %v940_v26 }
 0x11a   : > { %v1345_v12 = vmul.f32 %v1344_v7, %v3199_v52 }
 0x11c   : > { %v1346_v18 = vadd.f32 0.112945676, %v1345_v12 }
 0x11e   : > { %v1347_v19 = vmul.f32 %v1346_v18, %v3199_v52 }
 0x12a   : > { %v979_v29 = vpop.f32.mrf.mxu0 }
 0x12b   : > { %v980_v0 = vadd.f32 %v979_v29, %v960_v28  ;;  %v1348_v28 = vadd.f32 0.4994258, %v1347_v19 }
 0x12d   : > { %v999_v31 = vpop.f32.mrf.mxu1 }
 0x12e   : > { %v1000_v33 = vadd.f32 %v999_v31, %v980_v0  ;;  %v1019_v63 = vpop.f32.mrf.mxu2 }
 0x130   : > { %v1020_v10 = vadd.f32 %v1019_v63, %v1000_v33  ;;  %v1349_v33 = vmul.f32 %v1348_v28, %v3199_v52 }
 0x131   : > { %v1039_v35 = vpop.f32.mrf.mxu3 }
 0x132   : > { %v1040_v14 = vadd.f32 %v1039_v35, %v1020_v10  ;;  %v3219_v37 = vadd.f32 1.0, %v1349_v33 }
 0x134   : > { %v1059_v16 = vpop.f32.mrf.mxu0  ;;  %vm1356_vm3 = vweird.f32 %v3219_v37  ;;  %v1362_v28 = vand.u32 2147483648, %v3219_v37 }
 0x135   : > { %v1060_v38 = vadd.f32 %v1059_v16, %v1040_v14  ;;  %v1332_v16 = vmul.f32 %v1331_v32, %v3199_v52 }
 0x136   : > { %v1079_v5 = vpop.f32.mrf.mxu1  ;;  %v1363_v33 = vor.u32 1.1754944e-38, %v1362_v28 }
 0x137   : > { %v1080_v39 = vadd.f32 %v1079_v5, %v1060_v38 }
 0x138   : > { %v1099_v40 = vpop.f32.mrf.mxu2 }
 0x139   : > { %v1100_v42 = vadd.f32 %v1099_v40, %v1080_v39  ;;  %v1333_v39 = vadd.f32 0.0036580483, %v1332_v16 }
 0x13a   : > { %v1119_v43 = vpop.f32.mrf.mxu3 }
 0x13b   : > { %v3183_v45 = vadd.f32 %v1119_v43, %v1100_v42 }
 0x13d   : > { %v3188_v47 = vmul.f32 0.70710677, %v3183_v45 }
 0x13f   : > { %v1368_v49 = vmul.f32 %v3188_v47, %v3188_v47 }
 0x141   : > { %v3197_v51 = vmin.f32 %v1368_v49, 16.0  ;;  %v1334_v49 = vmul.f32 %v1333_v39, %v3199_v52 }
 0x143   : > { %v1381_v53 = vmul.f32 3.8918573e-05, %v3197_v51  ;;  %v1370_v58 = vmul.f32 2.1237322e-06, %v3197_v51  ;;  %v1335_v60 = vadd.f32 0.05243302, %v1334_v49 }
 0x145   : > { %v1382_v57 = vadd.f32 0.001143296, %v1381_v53  ;;  %v1371_v0 = vadd.f32 0.00028619796, %v1370_v58 }
 0x147   : > { %v1383_v62 = vmul.f32 %v1382_v57, %v3197_v51  ;;  %v1372_v36 = vmul.f32 %v1371_v0, %v3197_v51 }
 0x149   : > { %v1384_v4 = vadd.f32 0.014752088, %v1383_v62  ;;  %v1373_v5 = vadd.f32 0.0036580483, %v1372_v36 }
 0x14b   : > { %v1385_v9 = vmul.f32 %v1384_v4, %v3197_v51  ;;  %v1374_v41 = vmul.f32 %v1373_v5, %v3197_v51 }
 0x14d   : > { %v1386_v15 = vadd.f32 0.112945676, %v1385_v9  ;;  %v1375_v55 = vadd.f32 0.05243302, %v1374_v41 }
 0x14f   : > { %v1387_v22 = vmul.f32 %v1386_v15, %v3197_v51  ;;  %v1376_v2 = vmul.f32 %v1375_v55, %v3197_v51 }
 0x151   : > { %v1388_v26 = vadd.f32 0.4994258, %v1387_v22 }
 0x153   : > { %v1389_v30 = vmul.f32 %v1388_v26, %v3197_v51 }
 0x155   : > { %v3213_v10 = vadd.f32 1.0, %v1389_v30 }
 0x157   : > { %1595 = vrcp.f32 %v3213_v10  ;;  %v1402_v26 = vand.u32 2147483648, %v3213_v10  ;;  %vm1396_vm2 = vweird.f32 %v3213_v10 }
 0x158   : > { %1597 = vrcp.f32 %v3219_v37 }
 0x159   : > { %v1403_v0 = vor.u32 1.1754944e-38, %v1402_v26 }
 0x15d   : > { %v1596_v44 = vpop.eup %1595 }
 0x15e   : > { %vm1397_vm0 = vweird.f32 %v1596_v44 }
 0x15f   : > { %vm1398_vm4 = vmor %vm1396_vm2, %vm1397_vm0 }
 0x170   : > { %v1139_v56 = vpop.f32.mrf.mxu0 }
 0x171   : > { %v1140_v59 = vadd.f32 %v1139_v56, %v718_v54  ;;  %v1598_v54 = vpop.eup %1597  ;;  %v1392_v56 = vmul.f32 %v1596_v44, %v3213_v10 }
 0x172   : > { %vm1357_vm1 = vweird.f32 %v1598_v54 }
 0x173   : > { %vm1358_vm5 = vmor %vm1356_vm3, %vm1357_vm1  ;;  %vm1518_vm1 = vcmask 7168  }
 0x174   : > { %v1159_v61 = vpop.f32.mrf.mxu1  ;;  %v1179_v3 = vpop.f32.mrf.mxu2 }
 0x175   : > { %v1160_v1 = vadd.f32 %v1159_v61, %v1140_v59  ;;  %v1352_v61 = vmul.f32 %v1598_v54, %v3219_v37 }
 0x177   : > { %v1180_v6 = vadd.f32 %v1179_v3, %v1160_v1  ;;  %v1393_v3 = vsub.f32 1.0, %v1392_v56  ;;  %v1353_v7 = vsub.f32 1.0, %v1352_v61  ;;  %v1454_v61 = vld [vmem:[%s3273_s3] sm:$0x7] }
 0x178   : > { %v1199_v8 = vpop.f32.mrf.mxu3 }
 0x179   : > { %v1200_v11 = vadd.f32 %v1199_v8, %v1180_v6  ;;  %v1336_v6 = vmul.f32 %v1335_v60, %v3199_v52  ;;  %v1394_v12 = vmul.f32 %v1596_v44, %v1393_v3 }
 0x17b   : > { %v1219_v13 = vpop.f32.mrf.mxu0  ;;  %v1337_v15 = vadd.f32 0.18741608, %v1336_v6  ;;  %v1456_v6 = vperm.slane %v1454_v61, 0 }
 0x17c   : > { %v1220_v17 = vadd.f32 %v1219_v13, %v1200_v11  ;;  %v1377_v11 = vadd.f32 0.18741608, %v1376_v2  ;;  %v1457_v2 = vperm.slane %v1454_v61, 1 }
 0x17d   : > { %v1239_v21 = vpop.f32.mrf.mxu1 }
 0x17e   : > { %v1240_v23 = vadd.f32 %v1239_v21, %v1220_v17  ;;  %v1354_v17 = vmul.f32 %v1598_v54, %v1353_v7  ;;  %v1378_v22 = vmul.f32 %v1377_v11, %v3197_v51 }
 0x17f   : > { %v1259_v24 = vpop.f32.mrf.mxu2 }
 0x180   : > { %v1260_v27 = vadd.f32 %v1259_v24, %v1240_v23  ;;  %v1395_v23 = vadd.f32 %v1596_v44, %v1394_v12  ;;  %v1338_v24 = vmul.f32 %v1337_v15, %v3199_v52  ;;  %v1355_v58 = vadd.f32 %v1598_v54, %v1354_v17 }
 0x181   : > { %v1279_v29 = vpop.f32.mrf.mxu3  ;;  %v1379_v30 = vadd.f32 1.1283791, %v1378_v22 }
 0x182   : > { %v1280_v31 = vadd.f32 %v1279_v29, %v1260_v27  ;;  %v1400_v27 = vand.u32 2147483647, %v3213_v10  ;;  %v1360_v29 = vand.u32 2147483647, %v3219_v37  ;;  %v1399_v52 = vsel %vm1398_vm4, %v1596_v44, %v1395_v23 }
 0x183   : > { %v1359_v32 = vsel %vm1358_vm5, %v1598_v54, %v1355_v58  ;;  %v1380_v10 = vmul.f32 %v1379_v30, %v3188_v47 }
 0x184   : > { %vm1401_vm6 = vcmp.eq.f32.partialorder %v1400_v27, 8.507059e+37  ;;  %vm1361_vm7 = vcmp.eq.f32.partialorder %v1360_v29, 8.507059e+37 }
 0x193   : > { %v1299_v63 = vpop.f32.mrf.mxu0 }
 0x194   : > { %v1300_v34 = vadd.f32 %v1299_v63, %v1280_v31  ;;  %v1339_v31 = vadd.f32 1.1283791, %v1338_v24  ;;  %v1404_v63 = vsel %vm1401_vm6, %v1403_v0, %v1399_v52 }
 0x195   : > { %v1319_v35 = vpop.f32.mrf.mxu1  ;;  %v1405_v5 = vmul.f32 %v1404_v63, %v1380_v10 }
 0x196   : > { %v3216_v14 = vadd.f32 %v1319_v35, %v1300_v34  ;;  %v1364_v35 = vsel %vm1361_vm7, %v1363_v33, %v1359_v32  ;;  %v1340_v16 = vmul.f32 %v1339_v31, %v3191_v48 }
 0x198   : > { %v3222_v38 = vmul.f32 0.70710677, %v3216_v14  ;;  %v1365_v39 = vmul.f32 %v1364_v35, %v1340_v16 }
 0x19a   : > { %v1408_v20 = vmul.f32 %v3222_v38, %v3222_v38 }
 0x19c   : > { %v3228_v40 = vmin.f32 %v1408_v20, 16.0 }
 0x19e   : > { %v1410_v42 = vmul.f32 2.1237322e-06, %v3228_v40  ;;  %v1421_v43 = vmul.f32 3.8918573e-05, %v3228_v40 }
 0x1a0   : > { %v1411_v50 = vadd.f32 0.00028619796, %v1410_v42  ;;  %v1422_v53 = vadd.f32 0.001143296, %v1421_v43  ;;  %v1581_v42 = vclamps-f32 %v1405_v5, 1.0 }
 0x1a2   : > { %v1412_v57 = vmul.f32 %v1411_v50, %v3228_v40  ;;  %v1423_v59 = vmul.f32 %v1422_v53, %v3228_v40  ;;  %v1580_v53 = vclamps-f32 %v1365_v39, 1.0  ;;  %v1449_v47 = vadd.f32 1.0, %v1581_v42 }
 0x1a4   : > { %v1424_v62 = vadd.f32 0.014752088, %v1423_v59  ;;  %v1413_v1 = vadd.f32 0.0036580483, %v1412_v57  ;;  %v1323_v57 = vmul.f32 0.5, %v3183_v45 }
 0x1a6   : > { %v1425_v4 = vmul.f32 %v1424_v62, %v3228_v40  ;;  %v1414_v9 = vmul.f32 %v1413_v1, %v3228_v40  ;;  %v1322_v62 = vmul.f32 0.5, %v3185_v46  ;;  %v1452_v1 = vmul.f32 %v1449_v47, %v1323_v57 }
 0x1a7   : > { %v1472_v46 = vstv %s1471_s11 }
 0x1a8   : > { %v1426_v8 = vadd.f32 0.112945676, %v1425_v4  ;;  %v1415_v21 = vadd.f32 0.05243302, %v1414_v9  ;;  %v1463_v9 = vmul.f32 %v1457_v2, %v1452_v1 }
 0x1aa   : > { %v1427_v13 = vmul.f32 %v1426_v8, %v3228_v40  ;;  %v1416_v51 = vmul.f32 %v1415_v21, %v3228_v40  ;;  %v1458_v8 = vperm.slane %v1454_v61, 2 }
 0x1ac   : > { %v1428_v18 = vadd.f32 0.4994258, %v1427_v13  ;;  %v1417_v34 = vadd.f32 0.18741608, %v1416_v51 }
 0x1ae   : > { %v1429_v19 = vmul.f32 %v1428_v18, %v3228_v40  ;;  %v1418_v37 = vmul.f32 %v1417_v34, %v3228_v40  ;;  %v1448_v40 = vadd.f32 1.0, %v1580_v53 }
 0x1b0   : > { %v1430_v25 = vadd.f32 1.0, %v1429_v19  ;;  %v1419_v44 = vadd.f32 1.1283791, %v1418_v37  ;;  %v1451_v4 = vmul.f32 %v1448_v40, %v1322_v62 }
 0x1b2   : > { %1599 = vrcp.f32 %v1430_v25  ;;  %v1442_v43 = vand.u32 2147483648, %v1430_v25  ;;  %v1440_v50 = vand.u32 2147483647, %v1430_v25  ;;  %vm1436_vm9 = vweird.f32 %v1430_v25 }
 0x1b3   : > { %v1420_v48 = vmul.f32 %v1419_v44, %v3222_v38  ;;  %v1324_v38 = vmul.f32 0.5, %v3216_v14  ;;  %v1462_v45 = vmul.f32 %v1456_v6, %v1451_v4 }
 0x1b4   : > { %v1443_v55 = vor.u32 1.1754944e-38, %v1442_v43  ;;  %vm1441_vm11 = vcmp.eq.f32.partialorder %v1440_v50, 8.507059e+37 }
 0x1b5   : > { %v1465_v13 = vadd.f32 %v1463_v9, %v1462_v45 }
 0x1b8   : > { %v1600_v36 = vpop.eup %1599 }
 0x1b9   : > { %v1432_v20 = vmul.f32 %v1600_v36, %v1430_v25  ;;  %vm1437_vm8 = vweird.f32 %v1600_v36 }
 0x1ba   : > { %vm1438_vm10 = vmor %vm1436_vm9, %vm1437_vm8 }
 0x1bb   : > { %v1433_v41 = vsub.f32 1.0, %v1432_v20 }
 0x1bd   : > { %v1434_v49 = vmul.f32 %v1600_v36, %v1433_v41 }
 0x1bf   : > { %v1435_v54 = vadd.f32 %v1600_v36, %v1434_v49 }
 0x1c1   : > { %v1439_v56 = vsel %vm1438_vm10, %v1600_v36, %v1435_v54 }
 0x1c2   : > { %v1444_v59 = vsel %vm1441_vm11, %v1443_v55, %v1439_v56 }
 0x1c3   : > { %v1445_v60 = vmul.f32 %v1444_v59, %v1420_v48 }
 0x1c5   : > { %v1582_v3 = vclamps-f32 %v1445_v60, 1.0 }
 0x1c7   : > { %v1450_v7 = vadd.f32 1.0, %v1582_v3 }
 0x1c9   : > { %v1453_v11 = vmul.f32 %v1450_v7, %v1324_v38 }
 0x1cb   : > { %v1464_v12 = vmul.f32 %v1458_v8, %v1453_v11 }
 0x1cd   : > { %v1467_v15 = vsel %vm1466_vm12, %v1464_v12, 0.0 }
 0x1ce   : > { %v1468_v17 = vadd.f32 %v1467_v15, %v1465_v13 }
 0x1d0   : > { %1469 = vadd.xlane.f32.xlu0 %v1468_v17 }
 0x243   : > { %v1470_v18 = vpop.xlane.xlu0 %1469 }
 0x244   : > { %v1473_v21 = vadd.f32 %v1472_v46, %v1470_v18 }
 0x246   : > { %v1475_v22 = vmul.f32 0.70710677, %v1473_v21  ;;  %v1474_v47 = vmul.f32 0.5, %v1473_v21 }
 0x248   : > { %v1476_v23 = vmul.f32 %v1475_v22, %v1475_v22 }
 0x24a   : > { %v1477_v19 = vmin.f32 %v1476_v23, 16.0 }
 0x24c   : > { %v1478_v24 = vmul.f32 2.1237322e-06, %v1477_v19  ;;  %v1489_v14 = vmul.f32 3.8918573e-05, %v1477_v19 }
 0x24e   : > { %v1479_v26 = vadd.f32 0.00028619796, %v1478_v24  ;;  %v1490_v58 = vadd.f32 0.001143296, %v1489_v14 }
 0x250   : > { %v1480_v27 = vmul.f32 %v1479_v26, %v1477_v19  ;;  %v1491_v25 = vmul.f32 %v1490_v58, %v1477_v19 }
 0x252   : > { %v1492_v28 = vadd.f32 0.014752088, %v1491_v25  ;;  %v1481_v51 = vadd.f32 0.0036580483, %v1480_v27 }
 0x254   : > { %v1493_v29 = vmul.f32 %v1492_v28, %v1477_v19  ;;  %v1482_v52 = vmul.f32 %v1481_v51, %v1477_v19 }
 0x256   : > { %v1494_v30 = vadd.f32 0.112945676, %v1493_v29  ;;  %v1483_v32 = vadd.f32 0.05243302, %v1482_v52 }
 0x258   : > { %v1495_v0 = vmul.f32 %v1494_v30, %v1477_v19  ;;  %v1484_v34 = vmul.f32 %v1483_v32, %v1477_v19 }
 0x25a   : > { %v1496_v31 = vadd.f32 0.4994258, %v1495_v0  ;;  %v1485_v10 = vadd.f32 0.18741608, %v1484_v34 }
 0x25c   : > { %v1497_v33 = vmul.f32 %v1496_v31, %v1477_v19  ;;  %v1486_v36 = vmul.f32 %v1485_v10, %v1477_v19 }
 0x25e   : > { %v1498_v63 = vadd.f32 1.0, %v1497_v33  ;;  %v1487_v20 = vadd.f32 1.1283791, %v1486_v36 }
 0x260   : > { %1601 = vrcp.f32 %v1498_v63  ;;  %v1510_v37 = vand.u32 2147483648, %v1498_v63  ;;  %v1508_v41 = vand.u32 2147483647, %v1498_v63  ;;  %vm1504_vm14 = vweird.f32 %v1498_v63 }
 0x261   : > { %v1488_v44 = vmul.f32 %v1487_v20, %v1475_v22 }
 0x262   : > { %v1511_v43 = vor.u32 1.1754944e-38, %v1510_v37  ;;  %vm1509_vm0 = vcmp.eq.f32.partialorder %v1508_v41, 8.507059e+37 }
 0x266   : > { %v1602_v35 = vpop.eup %1601 }
 0x267   : > { %v1500_v16 = vmul.f32 %v1602_v35, %v1498_v63  ;;  %vm1505_vm13 = vweird.f32 %v1602_v35 }
 0x268   : > { %vm1506_vm15 = vmor %vm1504_vm14, %vm1505_vm13 }
 0x269   : > { %v1501_v5 = vsub.f32 1.0, %v1500_v16 }
 0x26b   : > { %v1502_v39 = vmul.f32 %v1602_v35, %v1501_v5 }
 0x26d   : > { %v1503_v42 = vadd.f32 %v1602_v35, %v1502_v39 }
 0x26f   : > { %v1507_v49 = vsel %vm1506_vm15, %v1602_v35, %v1503_v42 }
 0x270   : > { %v1512_v50 = vsel %vm1509_vm0, %v1511_v43, %v1507_v49 }
 0x271   : > { %v1513_v53 = vmul.f32 %v1512_v50, %v1488_v44 }
 0x273   : > { %v1583_v54 = vclamps-f32 %v1513_v53, 1.0 }
 0x275   : > { %v1516_v55 = vadd.f32 1.0, %v1583_v54 }
 0x277   : > { %v1517_v48 = vmul.f32 %v1516_v55, %v1474_v47 }
 0x279   : > { %1519 = vst.msk [vmem:[%s223_s15] sm:$0xff] %vm1518_vm1, %v1517_v48 }
 0x27a PF: > { %s16_s20 = sadd.s32 1, %s1619_s20  }
 0x27b   : > { %p13_p4 = scmp.ge.s32.totalorder %s16_s20, 4  }
 0x27d   :  { %15 = sbr.rel (!%p13_p4) target bundleno = 2 (0x2), region = 70 }

</bundles_post_ra>
